<compile_context>
chip_gen: v6e
topology: v6e:2x2x1
jax: 0.10.0
libtpu: 0.0.40
codegen_flags: <defaults>
</compile_context>

<pallas_src>
import math

import jax
import jax.numpy as jnp
from jax.experimental import pallas as pl
from jax.experimental.pallas import tpu as pltpu

_NEG_INF = -1e30  # finite "-inf" for padded logit lanes (logits stay f32, so this is safe)


def _make_mlp_kernel(n_hidden_layers: int):
    """Kernel for one batch tile: (Linear+Tanh)^L -> Linear -> LogSoftmax.

    BN is already folded into the first Linear by the wrapper.
    refs layout:
      [0]                x_ref   (TB, n_emb_pad)     bf16
      [1 .. 1+2*(L+1))   (W_i bf16, b_i f32) pairs: L hidden layers + decoder
      [-1]               out_ref (TB, n_class_pad)   f32
    """

    def kernel(*refs):
        x_ref = refs[0]
        out_ref = refs[-1]
        wb = refs[1:-1]

        h = x_ref[...]                                            # bf16

        # --- hidden Linear + Tanh stack: bf16 MXU inputs, f32 accumulation ---
        for i in range(n_hidden_layers):
            w = wb[2 * i][...]                                    # (in_pad, out_pad) bf16
            b = wb[2 * i + 1][...]                                # (1, out_pad)      f32
            acc = jnp.dot(h, w, preferred_element_type=jnp.float32) + b
            h = jnp.tanh(acc).astype(jnp.bfloat16)                # f32 tanh, bf16 storage

        # --- Dropout: identity (eval semantics) ---

        # --- Decoder Linear (lane-dense padded N; padded bias lanes = -1e30) ---
        wd = wb[2 * n_hidden_layers][...]
        bd = wb[2 * n_hidden_layers + 1][...]
        logits = jnp.dot(h, wd, preferred_element_type=jnp.float32) + bd   # f32

        # --- LogSoftmax over dim=1 (stable; padded lanes contribute exp()==0) ---
        m = jnp.max(logits, axis=1, keepdims=True)
        s = logits - m
        lse = jnp.log(jnp.sum(jnp.exp(s), axis=1, keepdims=True))
        out_ref[...] = (s - lse).astype(out_ref.dtype)

    return kernel


def _pad2(a, rows, cols, fill=0.0):
    return jnp.pad(a, ((0, rows - a.shape[0]), (0, cols - a.shape[1])),
                   constant_values=fill)


def _pick_tile(batch, block_batch):
    """Batch tile (multiple of 8 sublanes); prefer an even tile count (v7x 2 TCs)."""
    b8 = 8 * pl.cdiv(batch, 8)
    tb = min(block_batch, b8)
    tb = max(8, 8 * (tb // 8))
    nt = pl.cdiv(batch, tb)
    if nt % 2 == 1 and b8 >= 16:
        tb_even = max(8, 8 * pl.cdiv(pl.cdiv(batch, nt + 1), 8))
        nt_even = pl.cdiv(batch, tb_even)
        if nt_even % 2 == 0:
            return tb_even, nt_even
    return tb, nt


def mlp_forward_pallas(x, params, n_mlp_layer, n_class, *, block_batch=512):
    """Runs the MLP forward pass with a batch-tiled Pallas TPU kernel.

    params: dict with 'gamma', 'beta' (shape (1, n_emb)) and 'layers' = list of
            (W, b) pairs, W already transposed to (in, out), b shaped (1, out).
    """
    B, n_emb = x.shape
    n_hidden_layers = n_mlp_layer            # MLP0 + (n_mlp_layer-1) extras, all followed by Tanh
    x = x.astype(jnp.float32)

    # --- BatchNorm1d training-mode batch stats in ONE pass over x (mean & E[x^2]
    #     fuse into a single HBM read), folded into the first Linear below.
    mean = jnp.mean(x, axis=0, keepdims=True)
    ex2 = jnp.mean(x * x, axis=0, keepdims=True)
    var = jnp.maximum(ex2 - mean * mean, 0.0)        # biased var, as in PyTorch fwd
    scale = params["gamma"] * jax.lax.rsqrt(var + 1e-5)
    shift = params["beta"] - mean * scale

    layers = params["layers"]
    n_hidden = layers[0][0].shape[1]

    # Fold BN into the first Linear:  (x*scale + shift) @ W1 + b1
    #   == x @ (scale^T * W1) + (shift @ W1 + b1)
    w1, b1 = layers[0]
    w1f = w1 * scale.T                               # scale rows of W1 (f32)
    b1f = b1 + shift @ w1
    folded = [(w1f, b1f)] + list(layers[1:])

    # --- Lane-dense padding of feature dims (zeros propagate harmlessly:
    #     zero W rows/cols, zero bias pads, tanh(0)=0; decoder bias pad = -1e30).
    n_emb_pad = 128 * pl.cdiv(n_emb, 128)
    n_hidden_pad = 128 * pl.cdiv(n_hidden, 128)
    n_class_pad = 128 * pl.cdiv(n_class, 128)

    flat = [None]
    in_pads = [n_emb_pad] + [n_hidden_pad] * (n_hidden_layers - 1)
    for (w, b), in_pad in zip(folded[:-1], in_pads):
        flat.append(_pad2(w, in_pad, n_hidden_pad).astype(jnp.bfloat16))
        flat.append(_pad2(b.astype(jnp.float32), 1, n_hidden_pad))
    wd, bd = folded[-1]
    flat.append(_pad2(wd, n_hidden_pad, n_class_pad).astype(jnp.bfloat16))
    flat.append(_pad2(bd.astype(jnp.float32), 1, n_class_pad, fill=_NEG_INF))

    # --- Batch tiling: big tiles (per-grid-step overhead amortized), even count.
    tb, num_tiles = _pick_tile(B, block_batch)
    b_pad = num_tiles * tb
    x_p = jnp.pad(x, ((0, b_pad - B), (0, n_emb_pad - n_emb))).astype(jnp.bfloat16)
    flat[0] = x_p

    # --- VMEM budget from the real footprint (cap at 3/4 of device VMEM;
    #     that's ~48 MiB on v7x's 64 MiB/TC, ~96 MiB on v5e/v6e).
    def _nbytes(a):
        return int(a.size) * jnp.dtype(a.dtype).itemsize

    resident_bytes = sum(_nbytes(a) for a in flat[1:])          # weights + biases
    x_tile_bytes = tb * n_emb_pad * 2                           # bf16 input tile
    out_tile_bytes = tb * n_class_pad * 4                       # f32 output tile
    act_bytes = tb * max(n_hidden_pad, n_class_pad) * 4         # f32 acc / logits
    needed = (2 * (x_tile_bytes + out_tile_bytes)               # double-buffered streams
              + 2 * resident_bytes                              # covers dbl-buffer fallback
              + 4 * act_bytes                                   # activation / cast slack
              + (4 << 20))                                      # compiler scratch headroom
    try:
        vmem_cap = int(pltpu.get_tpu_info().vmem_capacity_bytes)
    except Exception:
        vmem_cap = 64 << 20                                     # assume smallest (v7x per-TC)
    vmem_limit = min(max(needed, 16 << 20), (vmem_cap * 3) // 4)

    kernel = _make_mlp_kernel(n_hidden_layers)

    def _call(single_buffer_consts):
        extra = {"pipeline_mode": pl.Buffered(1)} if single_buffer_consts else {}

        def const_spec(a):
            nd = a.ndim
            return pl.BlockSpec(a.shape, lambda i, _n=nd: (0,) * _n, **extra)

        in_specs = [pl.BlockSpec((tb, n_emb_pad), lambda i: (i, 0))]
        in_specs += [const_spec(a) for a in flat[1:]]
        out_spec = pl.BlockSpec((tb, n_class_pad), lambda i: (i, 0))

        return pl.pallas_call(
            kernel,
            out_shape=jax.ShapeDtypeStruct((b_pad, n_class_pad), jnp.float32),
            grid=(num_tiles,),
            in_specs=in_specs,
            out_specs=out_spec,
            compiler_params=pltpu.CompilerParams(
                dimension_semantics=("parallel",),   # independent batch tiles (megacore/v7x)
                vmem_limit_bytes=int(vmem_limit),
            ),
        )(*flat)

    try:
        out_p = _call(True)         # single-buffer the once-fetched resident weights
    except Exception:
        out_p = _call(False)        # fallback: default double buffering

    return out_p[:B, :n_class]


def init_params(key, n_mlp_layer, n_emb, n_hidden, n_class):
    """Deterministic PyTorch-style init (uniform(-1/sqrt(fan_in), 1/sqrt(fan_in)))."""
    layers = []
    dims = [(n_emb, n_hidden)] + [(n_hidden, n_hidden)] * (n_mlp_layer - 1) + [(n_hidden, n_class)]
    keys = jax.random.split(key, 2 * len(dims))
    for i, (fan_in, fan_out) in enumerate(dims):
        bound = 1.0 / math.sqrt(fan_in)
        w = jax.random.uniform(keys[2 * i], (fan_in, fan_out), jnp.float32, -bound, bound)
        b = jax.random.uniform(keys[2 * i + 1], (1, fan_out), jnp.float32, -bound, bound)
        layers.append((w, b))
    gamma = jnp.ones((1, n_emb), jnp.float32)   # BatchNorm1d default weight
    beta = jnp.zeros((1, n_emb), jnp.float32)   # BatchNorm1d default bias
    return {"gamma": gamma, "beta": beta, "layers": layers}


def reference_forward(x, params):
    """Plain-JAX reference mirroring the kernel's numerics (folded BN, bf16 matmuls, f32 accum)."""
    x = x.astype(jnp.float32)
    mean = jnp.mean(x, axis=0, keepdims=True)
    ex2 = jnp.mean(x * x, axis=0, keepdims=True)
    var = jnp.maximum(ex2 - mean * mean, 0.0)
    scale = params["gamma"] * jax.lax.rsqrt(var + 1e-5)
    shift = params["beta"] - mean * scale
    layers = params["layers"]
    w1, b1 = layers[0]
    folded = [(w1 * scale.T, b1 + shift @ w1)] + list(layers[1:])
    h = x.astype(jnp.bfloat16)
    for (w, b) in folded[:-1]:
        acc = jnp.dot(h, w.astype(jnp.bfloat16), preferred_element_type=jnp.float32) + b
        h = jnp.tanh(acc).astype(jnp.bfloat16)
    wd, bd = folded[-1]
    logits = jnp.dot(h, wd.astype(jnp.bfloat16), preferred_element_type=jnp.float32) + bd
    return jax.nn.log_softmax(logits, axis=1)


if __name__ == "__main__":
    # Small shapes consistent with the module; batch large enough to exercise
    # the batch tiling (2 tiles -> even count for the 2-TC split) while staying tiny.
    n_mlp_layer = 2
    n_emb = 32
    n_hidden = 32
    n_class = 8
    batch = 256

    key = jax.random.PRNGKey(0)
    k_x, k_p = jax.random.split(key)
    x = jax.random.normal(k_x, (batch, n_emb), jnp.float32)
    params = init_params(k_p, n_mlp_layer, n_emb, n_hidden, n_class)

    out = mlp_forward_pallas(x, params, n_mlp_layer, n_class, block_batch=512)
    out = jax.block_until_ready(out)

    ref = reference_forward(x, params)
    assert out.shape == (batch, n_class)
    max_err = float(jnp.max(jnp.abs(out - ref)))
    assert jnp.allclose(out, ref, atol=2e-3, rtol=2e-3), f"mismatch vs reference (max abs err {max_err})"

    print("KERNEL_OK")
</pallas_src>

<mosaic_0001>
module attributes {stable_mosaic.version = 11 : i64} {
  func.func @kernel(%arg0: i32, %arg1: memref<128x128xbf16, #tpu.memory_space<vmem>>, %arg2: memref<128x128xbf16, #tpu.memory_space<vmem>>, %arg3: memref<1x128xf32, #tpu.memory_space<vmem>>, %arg4: memref<128x128xbf16, #tpu.memory_space<vmem>>, %arg5: memref<1x128xf32, #tpu.memory_space<vmem>>, %arg6: memref<128x128xbf16, #tpu.memory_space<vmem>>, %arg7: memref<1x128xf32, #tpu.memory_space<vmem>>, %arg8: memref<128x128xf32, #tpu.memory_space<vmem>>) attributes {dimension_semantics = [#tpu.dimension_semantics<parallel>], iteration_bounds = array<i64: 2>, scalar_prefetch = 0 : i64, scratch_operands = 0 : i64, tpu.core_type = #tpu.core_type<tc>, window_params = [{transform_indices = @transform_0, window_bounds = array<i64: 128, 128>}, {pipeline_mode = #tpu.pipeline_mode<synchronous>, transform_indices = @transform_1, window_bounds = array<i64: 128, 128>}, {pipeline_mode = #tpu.pipeline_mode<synchronous>, transform_indices = @transform_2, window_bounds = array<i64: 1, 128>}, {pipeline_mode = #tpu.pipeline_mode<synchronous>, transform_indices = @transform_3, window_bounds = array<i64: 128, 128>}, {pipeline_mode = #tpu.pipeline_mode<synchronous>, transform_indices = @transform_4, window_bounds = array<i64: 1, 128>}, {pipeline_mode = #tpu.pipeline_mode<synchronous>, transform_indices = @transform_5, window_bounds = array<i64: 128, 128>}, {pipeline_mode = #tpu.pipeline_mode<synchronous>, transform_indices = @transform_6, window_bounds = array<i64: 1, 128>}, {transform_indices = @transform_7, window_bounds = array<i64: 128, 128>}]} {
    %c0 = arith.constant 0 : index
    %c0_0 = arith.constant 0 : index
    %0 = vector.load %arg1[%c0, %c0_0] : memref<128x128xbf16, #tpu.memory_space<vmem>>, vector<128x128xbf16>
    %c0_1 = arith.constant 0 : index
    %c0_2 = arith.constant 0 : index
    %1 = vector.load %arg2[%c0_1, %c0_2] : memref<128x128xbf16, #tpu.memory_space<vmem>>, vector<128x128xbf16>
    %c0_3 = arith.constant 0 : index
    %c0_4 = arith.constant 0 : index
    %2 = vector.load %arg3[%c0_3, %c0_4] : memref<1x128xf32, #tpu.memory_space<vmem>>, vector<1x128xf32>
    %cst = arith.constant dense<0.000000e+00> : vector<128x128xf32>
    %3 = tpu.matmul %0, %1, %cst {dimension_numbers = #tpu.dot_dimension_numbers<[1], [0], [0], [1], [0, 0, 1, 1], [], []>} : vector<128x128xbf16>, vector<128x128xbf16>, vector<128x128xf32> -> vector<128x128xf32>
    %4 = vector.broadcast %2 : vector<1x128xf32> to vector<128x128xf32>
    %5 = arith.addf %3, %4 : vector<128x128xf32>
    %6 = math.tanh %5 : vector<128x128xf32>
    %7 = arith.truncf %6 : vector<128x128xf32> to vector<128x128xbf16>
    %c0_5 = arith.constant 0 : index
    %c0_6 = arith.constant 0 : index
    %8 = vector.load %arg4[%c0_5, %c0_6] : memref<128x128xbf16, #tpu.memory_space<vmem>>, vector<128x128xbf16>
    %c0_7 = arith.constant 0 : index
    %c0_8 = arith.constant 0 : index
    %9 = vector.load %arg5[%c0_7, %c0_8] : memref<1x128xf32, #tpu.memory_space<vmem>>, vector<1x128xf32>
    %cst_9 = arith.constant dense<0.000000e+00> : vector<128x128xf32>
    %10 = tpu.matmul %7, %8, %cst_9 {dimension_numbers = #tpu.dot_dimension_numbers<[1], [0], [0], [1], [0, 0, 1, 1], [], []>} : vector<128x128xbf16>, vector<128x128xbf16>, vector<128x128xf32> -> vector<128x128xf32>
    %11 = vector.broadcast %9 : vector<1x128xf32> to vector<128x128xf32>
    %12 = arith.addf %10, %11 : vector<128x128xf32>
    %13 = math.tanh %12 : vector<128x128xf32>
    %14 = arith.truncf %13 : vector<128x128xf32> to vector<128x128xbf16>
    %c0_10 = arith.constant 0 : index
    %c0_11 = arith.constant 0 : index
    %15 = vector.load %arg6[%c0_10, %c0_11] : memref<128x128xbf16, #tpu.memory_space<vmem>>, vector<128x128xbf16>
    %c0_12 = arith.constant 0 : index
    %c0_13 = arith.constant 0 : index
    %16 = vector.load %arg7[%c0_12, %c0_13] : memref<1x128xf32, #tpu.memory_space<vmem>>, vector<1x128xf32>
    %cst_14 = arith.constant dense<0.000000e+00> : vector<128x128xf32>
    %17 = tpu.matmul %14, %15, %cst_14 {dimension_numbers = #tpu.dot_dimension_numbers<[1], [0], [0], [1], [0, 0, 1, 1], [], []>} : vector<128x128xbf16>, vector<128x128xbf16>, vector<128x128xf32> -> vector<128x128xf32>
    %18 = vector.broadcast %16 : vector<1x128xf32> to vector<128x128xf32>
    %19 = arith.addf %17, %18 : vector<128x128xf32>
    %cst_15 = arith.constant dense<0xFF800000> : vector<128xf32>
    %20 = vector.multi_reduction <maximumf>, %19, %cst_15 [1] : vector<128x128xf32> to vector<128xf32>
    %21 = vector.shape_cast %20 : vector<128xf32> to vector<128x1xf32>
    %22 = vector.broadcast %21 : vector<128x1xf32> to vector<128x128xf32>
    %23 = arith.subf %19, %22 : vector<128x128xf32>
    %24 = math.exp %23 : vector<128x128xf32>
    %cst_16 = arith.constant dense<0.000000e+00> : vector<128xf32>
    %25 = vector.multi_reduction <add>, %24, %cst_16 [1] : vector<128x128xf32> to vector<128xf32>
    %26 = vector.shape_cast %25 : vector<128xf32> to vector<128x1xf32>
    %27 = math.log %26 : vector<128x1xf32>
    %28 = vector.broadcast %27 : vector<128x1xf32> to vector<128x128xf32>
    %29 = arith.subf %23, %28 : vector<128x128xf32>
    %c0_17 = arith.constant 0 : index
    %c0_18 = arith.constant 0 : index
    %30 = vector.load %arg8[%c0_17, %c0_18] : memref<128x128xf32, #tpu.memory_space<vmem>>, vector<128x128xf32>
    tpu.vector_store %arg8[%c0_17, %c0_18], %29 {strides = array<i32>} : memref<128x128xf32, #tpu.memory_space<vmem>>, vector<128x128xf32>,
    return
  }
  func.func @transform_0(%arg0: i32) -> (i32, i32) {
    %c0_i32 = arith.constant 0 : i32
    %c0_i32_0 = arith.constant 0 : i32
    return %arg0, %c0_i32 : i32, i32
  }
  func.func @transform_1(%arg0: i32) -> (i32, i32) {
    %c0_i32 = arith.constant 0 : i32
    %c0_i32_0 = arith.constant 0 : i32
    %c0_i32_1 = arith.constant 0 : i32
    return %c0_i32, %c0_i32_0 : i32, i32
  }
  func.func @transform_2(%arg0: i32) -> (i32, i32) {
    %c0_i32 = arith.constant 0 : i32
    %c0_i32_0 = arith.constant 0 : i32
    %c0_i32_1 = arith.constant 0 : i32
    return %c0_i32, %c0_i32_0 : i32, i32
  }
  func.func @transform_3(%arg0: i32) -> (i32, i32) {
    %c0_i32 = arith.constant 0 : i32
    %c0_i32_0 = arith.constant 0 : i32
    %c0_i32_1 = arith.constant 0 : i32
    return %c0_i32, %c0_i32_0 : i32, i32
  }
  func.func @transform_4(%arg0: i32) -> (i32, i32) {
    %c0_i32 = arith.constant 0 : i32
    %c0_i32_0 = arith.constant 0 : i32
    %c0_i32_1 = arith.constant 0 : i32
    return %c0_i32, %c0_i32_0 : i32, i32
  }
  func.func @transform_5(%arg0: i32) -> (i32, i32) {
    %c0_i32 = arith.constant 0 : i32
    %c0_i32_0 = arith.constant 0 : i32
    %c0_i32_1 = arith.constant 0 : i32
    return %c0_i32, %c0_i32_0 : i32, i32
  }
  func.func @transform_6(%arg0: i32) -> (i32, i32) {
    %c0_i32 = arith.constant 0 : i32
    %c0_i32_0 = arith.constant 0 : i32
    %c0_i32_1 = arith.constant 0 : i32
    return %c0_i32, %c0_i32_0 : i32, i32
  }
  func.func @transform_7(%arg0: i32) -> (i32, i32) {
    %c0_i32 = arith.constant 0 : i32
    %c0_i32_0 = arith.constant 0 : i32
    return %arg0, %c0_i32 : i32, i32
  }
}

module attributes {stable_mosaic.version = 11 : i64} {
  func.func @kernel(%arg0: i32, %arg1: memref<128x128xbf16, #tpu.memory_space<vmem>>, %arg2: memref<128x128xbf16, #tpu.memory_space<vmem>>, %arg3: memref<1x128xf32, #tpu.memory_space<vmem>>, %arg4: memref<128x128xbf16, #tpu.memory_space<vmem>>, %arg5: memref<1x128xf32, #tpu.memory_space<vmem>>, %arg6: memref<128x128xbf16, #tpu.memory_space<vmem>>, %arg7: memref<1x128xf32, #tpu.memory_space<vmem>>, %arg8: memref<128x128xf32, #tpu.memory_space<vmem>>) attributes {dimension_semantics = [#tpu.dimension_semantics<parallel>], iteration_bounds = array<i64: 2>, scalar_prefetch = 0 : i64, scratch_operands = 0 : i64, tpu.core_type = #tpu.core_type<tc>, window_params = [{transform_indices = @transform_0, window_bounds = array<i64: 128, 128>}, {pipeline_mode = #tpu.pipeline_mode<synchronous>, transform_indices = @transform_1, window_bounds = array<i64: 128, 128>}, {pipeline_mode = #tpu.pipeline_mode<synchronous>, transform_indices = @transform_2, window_bounds = array<i64: 1, 128>}, {pipeline_mode = #tpu.pipeline_mode<synchronous>, transform_indices = @transform_3, window_bounds = array<i64: 128, 128>}, {pipeline_mode = #tpu.pipeline_mode<synchronous>, transform_indices = @transform_4, window_bounds = array<i64: 1, 128>}, {pipeline_mode = #tpu.pipeline_mode<synchronous>, transform_indices = @transform_5, window_bounds = array<i64: 128, 128>}, {pipeline_mode = #tpu.pipeline_mode<synchronous>, transform_indices = @transform_6, window_bounds = array<i64: 1, 128>}, {transform_indices = @transform_7, window_bounds = array<i64: 128, 128>}]} {
    %c0 = arith.constant 0 : index
    %c0_0 = arith.constant 0 : index
    %0 = vector.load %arg1[%c0, %c0_0] : memref<128x128xbf16, #tpu.memory_space<vmem>>, vector<128x128xbf16>
    %c0_1 = arith.constant 0 : index
    %c0_2 = arith.constant 0 : index
    %1 = vector.load %arg2[%c0_1, %c0_2] : memref<128x128xbf16, #tpu.memory_space<vmem>>, vector<128x128xbf16>
    %c0_3 = arith.constant 0 : index
    %c0_4 = arith.constant 0 : index
    %2 = vector.load %arg3[%c0_3, %c0_4] : memref<1x128xf32, #tpu.memory_space<vmem>>, vector<1x128xf32>
    %cst = arith.constant dense<0.000000e+00> : vector<128x128xf32>
    %3 = tpu.matmul %0, %1, %cst {dimension_numbers = #tpu.dot_dimension_numbers<[1], [0], [0], [1], [0, 0, 1, 1], [], []>} : vector<128x128xbf16>, vector<128x128xbf16>, vector<128x128xf32> -> vector<128x128xf32>
    %4 = vector.broadcast %2 : vector<1x128xf32> to vector<128x128xf32>
    %5 = arith.addf %3, %4 : vector<128x128xf32>
    %6 = math.tanh %5 : vector<128x128xf32>
    %7 = arith.truncf %6 : vector<128x128xf32> to vector<128x128xbf16>
    %c0_5 = arith.constant 0 : index
    %c0_6 = arith.constant 0 : index
    %8 = vector.load %arg4[%c0_5, %c0_6] : memref<128x128xbf16, #tpu.memory_space<vmem>>, vector<128x128xbf16>
    %c0_7 = arith.constant 0 : index
    %c0_8 = arith.constant 0 : index
    %9 = vector.load %arg5[%c0_7, %c0_8] : memref<1x128xf32, #tpu.memory_space<vmem>>, vector<1x128xf32>
    %cst_9 = arith.constant dense<0.000000e+00> : vector<128x128xf32>
    %10 = tpu.matmul %7, %8, %cst_9 {dimension_numbers = #tpu.dot_dimension_numbers<[1], [0], [0], [1], [0, 0, 1, 1], [], []>} : vector<128x128xbf16>, vector<128x128xbf16>, vector<128x128xf32> -> vector<128x128xf32>
    %11 = vector.broadcast %9 : vector<1x128xf32> to vector<128x128xf32>
    %12 = arith.addf %10, %11 : vector<128x128xf32>
    %13 = math.tanh %12 : vector<128x128xf32>
    %14 = arith.truncf %13 : vector<128x128xf32> to vector<128x128xbf16>
    %c0_10 = arith.constant 0 : index
    %c0_11 = arith.constant 0 : index
    %15 = vector.load %arg6[%c0_10, %c0_11] : memref<128x128xbf16, #tpu.memory_space<vmem>>, vector<128x128xbf16>
    %c0_12 = arith.constant 0 : index
    %c0_13 = arith.constant 0 : index
    %16 = vector.load %arg7[%c0_12, %c0_13] : memref<1x128xf32, #tpu.memory_space<vmem>>, vector<1x128xf32>
    %cst_14 = arith.constant dense<0.000000e+00> : vector<128x128xf32>
    %17 = tpu.matmul %14, %15, %cst_14 {dimension_numbers = #tpu.dot_dimension_numbers<[1], [0], [0], [1], [0, 0, 1, 1], [], []>} : vector<128x128xbf16>, vector<128x128xbf16>, vector<128x128xf32> -> vector<128x128xf32>
    %18 = vector.broadcast %16 : vector<1x128xf32> to vector<128x128xf32>
    %19 = arith.addf %17, %18 : vector<128x128xf32>
    %cst_15 = arith.constant dense<0xFF800000> : vector<128xf32>
    %20 = vector.multi_reduction <maximumf>, %19, %cst_15 [1] : vector<128x128xf32> to vector<128xf32>
    %21 = vector.shape_cast %20 : vector<128xf32> to vector<128x1xf32>
    %22 = vector.broadcast %21 : vector<128x1xf32> to vector<128x128xf32>
    %23 = arith.subf %19, %22 : vector<128x128xf32>
    %24 = math.exp %23 : vector<128x128xf32>
    %cst_16 = arith.constant dense<0.000000e+00> : vector<128xf32>
    %25 = vector.multi_reduction <add>, %24, %cst_16 [1] : vector<128x128xf32> to vector<128xf32>
    %26 = vector.shape_cast %25 : vector<128xf32> to vector<128x1xf32>
    %27 = math.log %26 : vector<128x1xf32>
    %28 = vector.broadcast %27 : vector<128x1xf32> to vector<128x128xf32>
    %29 = arith.subf %23, %28 : vector<128x128xf32>
    %c0_17 = arith.constant 0 : index
    %c0_18 = arith.constant 0 : index
    %30 = vector.load %arg8[%c0_17, %c0_18] : memref<128x128xf32, #tpu.memory_space<vmem>>, vector<128x128xf32>
    tpu.vector_store %arg8[%c0_17, %c0_18], %29 {strides = array<i32>} : memref<128x128xf32, #tpu.memory_space<vmem>>, vector<128x128xf32>,
    return
  }
  func.func @transform_0(%arg0: i32) -> (i32, i32) {
    %c0_i32 = arith.constant 0 : i32
    %c0_i32_0 = arith.constant 0 : i32
    return %arg0, %c0_i32 : i32, i32
  }
  func.func @transform_1(%arg0: i32) -> (i32, i32) {
    %c0_i32 = arith.constant 0 : i32
    %c0_i32_0 = arith.constant 0 : i32
    %c0_i32_1 = arith.constant 0 : i32
    return %c0_i32, %c0_i32_0 : i32, i32
  }
  func.func @transform_2(%arg0: i32) -> (i32, i32) {
    %c0_i32 = arith.constant 0 : i32
    %c0_i32_0 = arith.constant 0 : i32
    %c0_i32_1 = arith.constant 0 : i32
    return %c0_i32, %c0_i32_0 : i32, i32
  }
  func.func @transform_3(%arg0: i32) -> (i32, i32) {
    %c0_i32 = arith.constant 0 : i32
    %c0_i32_0 = arith.constant 0 : i32
    %c0_i32_1 = arith.constant 0 : i32
    return %c0_i32, %c0_i32_0 : i32, i32
  }
  func.func @transform_4(%arg0: i32) -> (i32, i32) {
    %c0_i32 = arith.constant 0 : i32
    %c0_i32_0 = arith.constant 0 : i32
    %c0_i32_1 = arith.constant 0 : i32
    return %c0_i32, %c0_i32_0 : i32, i32
  }
  func.func @transform_5(%arg0: i32) -> (i32, i32) {
    %c0_i32 = arith.constant 0 : i32
    %c0_i32_0 = arith.constant 0 : i32
    %c0_i32_1 = arith.constant 0 : i32
    return %c0_i32, %c0_i32_0 : i32, i32
  }
  func.func @transform_6(%arg0: i32) -> (i32, i32) {
    %c0_i32 = arith.constant 0 : i32
    %c0_i32_0 = arith.constant 0 : i32
    %c0_i32_1 = arith.constant 0 : i32
    return %c0_i32, %c0_i32_0 : i32, i32
  }
  func.func @transform_7(%arg0: i32) -> (i32, i32) {
    %c0_i32 = arith.constant 0 : i32
    %c0_i32_0 = arith.constant 0 : i32
    return %arg0, %c0_i32 : i32, i32
  }
}

</mosaic_0001>

<bundles_post_ra>
// kernel: tpu_custom_call.1
= control target key start
LH: loop header
LB: loop body
LE: loop exit
PB: predicated region body
PF: predicated region fallthrough
CT: control target
= control target key end

     0   :  { %s2280_s0 = inlined_call_operand.hbm [shape: bf16[256,128], index: 0, kind: input, shape index: {}]   ;;  %s2281_s1 = inlined_call_operand.hbm [shape: bf16[128,128], index: 1, kind: input, shape index: {}]   ;;  %s2282_s2 = inlined_call_operand.vmem [shape: f32[1,128], index: 2, kind: input, shape index: {}]   ;;  %s2283_s3 = inlined_call_operand.hbm [shape: bf16[128,128], index: 3, kind: input, shape index: {}]   ;;  %s2284_s4 = inlined_call_operand.vmem [shape: f32[1,128], index: 4, kind: input, shape index: {}]   ;;  %s2285_s5 = inlined_call_operand.hbm [shape: bf16[128,128], index: 5, kind: input, shape index: {}]   ;;  %s2286_s6 = inlined_call_operand.vmem [shape: f32[1,128], index: 6, kind: input, shape index: {}]   ;;  %s2287_s7 = inlined_call_operand.hbm [shape: f32[256,128], index: 7, kind: output, shape index: {}]  }
   0x1   :  { %2294 = sst [smem:[#allocation15_spill]] %s2281_s1 }
   0x2   :  { %12 = vsyncpa [#allocation3], 0 }
   0x3   :  { %14 = vsyncpa [#allocation3 + $0x1], 0 }
   0x4   :  { %15 = vsyncpa [#allocation6], 0 }
   0x5   :  { %16 = vsyncpa [#allocation9], 0 }
   0x6   :  { %17 = vsyncpa [#allocation4], 0 }
   0x7   :  { %19 = vsyncpa [#allocation4 + $0x1], 0  ;;  %s1939_s24 = smov 0   ;;  %s1941_s25 = smov 0  }
   0x8   :  { %s1943_s26 = smov 0   ;;  %s1945_s27 = smov 0  }
   0x9 LB: > { %s1960_s28 = sadd.s32 4294967295, %s1888_s27   ;;  %s1252_s29 = sadd.s32 4294967294, %s1888_s27   ;;  %s1888_s27 = sphi %s1945_s27, %s2316_s27   ;;  %s1884_s26 = sphi %s1943_s26, %s2315_s26   ;;  %s1880_s25 = sphi %s1941_s25, %s2314_s25   ;;  %s1876_s24 = sphi %s1939_s24, %s2313_s24  }
   0xa   : > { %p45_p0 = scmp.ne.s32.totalorder %s1880_s25, %s1876_s24  ;;  %p2288_p1 = scmp.eq.s32.totalorder %s1960_s28, 0 }
   0xb   : > { %p195_p2 = scmp.eq.s32.totalorder %s1960_s28, 1  ;;  %p201_p3 = scmp.eq.s32.totalorder %s1252_s29, 1 }
   0xc   : > { %p1969_p4 = por %p2288_p1, %p45_p0  ;;  %p1253_p5 = scmp.ge.s32.totalorder %s1888_s27, 1 }
   0xd   : > { %p1974_p6 = por %p201_p3, %p45_p0  ;;  %p208_p7 = scmp.lt.s32.totalorder %s1888_s27, 3 }
   0xe   : > { %s2295_s30 = scalar_select %p1969_p4, 1, 0 }
   0xf   : > { %s2296_s8 = scalar_select %p1974_p6, 1, 0 }
  0x10   : > { %p1979_p8 = pnand %p1253_p5, %p208_p7  ;;  %s1890_s10 = smov [#allocation5]  }
  0x11   : > { %s220_s11 = sshll.u32 %s1890_s10, 4  ;;  %s1891_s13 = smov [#allocation7]   ;;  %s221_s11 = int_to_ptr.vmem [resolvable:$true] %s220_s11 }
  0x12   : > { %s2297_s9 = scalar_select %p1979_p8, 1, 0 }
  0x13   : > { %p1485_p9 = pneg %p1979_p8  ;;  %s236_s14 = sshll.u32 %s1891_s13, 4  ;;  %s237_s14 = int_to_ptr.vmem [resolvable:$true] %s236_s14 }
  0x14   : > { %s1892_s15 = smov [#allocation8]   ;;  %s1721_s17 = scalar_lea.vmem %s221_s11, 1024 }
  0x15   : > { %p1988_p11 = pnand %p1485_p9, %p2288_p1  ;;  %s252_s16 = sshll.u32 %s1892_s15, 4  ;;  %s253_s16 = int_to_ptr.vmem [resolvable:$true] %s252_s16 }
  0x16   : > { %p1722_p13 = scmp.ne.s32.totalorder %s221_s11, %s1721_s17  ;;  %p1729_p5 = scmp.lt.s32.totalorder %s221_s11, %s221_s11 }
  0x17   : > { %p1712_p12 = pneg %p1988_p11  ;;  %p1730_p7 = scmp.lt.s32.totalorder %s1721_s17, %s1721_s17 }
  0x19   : > { %p1724_p0 = pnand %p1722_p13, %p1712_p12  ;;  %p1731_p9 = por %p1730_p7, %p1729_p5 }
  0x1b   : > { %p1725_p3 = pneg %p1724_p0 }
  0x1d   : > { %p1732_p10 = pnand %p1731_p9, %p1725_p3 }
  0x1f   : > { %1735 = shalt.err (!%p1732_p10)
}
  0x20   : > { %s2289_s18 = smov 64   ;;  %s2290_s19 = smov 4  }
  0x21   : > { %s2299_s1 = sld [smem:[#allocation15_spill]]  ;;  %s1747_s22 = scalar_lea.vmem %s237_s14, 1024 }
  0x22   : > { %p1748_p13 = scmp.ne.s32.totalorder %s237_s14, %s1747_s22  ;;  %p1755_p3 = scmp.lt.s32.totalorder %s237_s14, %s237_s14 }
  0x23   : > { %p1756_p10 = scmp.lt.s32.totalorder %s1747_s22, %s1747_s22 }
  0x24   : > { %p1750_p0 = pnand %p1748_p13, %p1712_p12 }
  0x25   : > { %p1757_p7 = por %p1756_p10, %p1755_p3 }
  0x26   : > { %p1751_p5 = pneg %p1750_p0 }
  0x27   : > { %1488 = dma.hbm_to_vmem [thread:$0]  (!%p1988_p11), %s2299_s1, 1024, %s221_s11, [#allocation6], %s2289_s18, %s2289_s18, %s2290_s19  }
  0x28   : > { %p1758_p9 = pnand %p1757_p7, %p1751_p5 }
  0x2a   : > { %1761 = shalt.err (!%p1758_p9)
}
  0x2b   : > { %1491 = dma.hbm_to_vmem [thread:$0]  (!%p1988_p11), %s2283_s3, 1024, %s237_s14, [#allocation6], %s2289_s18, %s2289_s18, %s2290_s19  }
  0x2c   : > { %s1773_s10 = scalar_lea.vmem %s253_s16, 1024  ;;  %p1781_p3 = scmp.lt.s32.totalorder %s253_s16, %s253_s16 }
  0x2d   : > { %p1774_p1 = scmp.ne.s32.totalorder %s253_s16, %s1773_s10  ;;  %p1782_p5 = scmp.lt.s32.totalorder %s1773_s10, %s1773_s10 }
  0x2f   : > { %p1776_p13 = pnand %p1774_p1, %p1712_p12  ;;  %p1783_p10 = por %p1782_p5, %p1781_p3 }
  0x31   : > { %p1777_p0 = pneg %p1776_p13 }
  0x33   : > { %p1784_p7 = pnand %p1783_p10, %p1777_p0 }
  0x35   : > { %1787 = shalt.err (!%p1784_p7)
}
  0x36   : > { %1494 = dma.hbm_to_vmem [thread:$0]  (!%p1988_p11), %s2285_s5, 1024, %s253_s16, [#allocation9], %s2289_s18, %s2289_s18, %s2290_s19  }
  0x37   : > { %s2028_s14 = sadd.s32 1, %s1888_s27   ;;  %s32_s15 = sadd.s32 1, %s1884_s26 }
  0x38   : > { %s29_s12 = ssub.s32 %s1888_s27, %s2028_s14  ;;  %p39_p12 = scmp.ne.s32.totalorder %s1884_s26, %s1880_s25 }
  0x39   : > { %p30_p1 = scmp.eq.s32.totalorder %s29_s12, 0  ;;  %p40_p9 = scmp.eq.s32.totalorder %s1888_s27, 0 }
  0x3a   : > { %p1506_p13 = scmp.lt.s32.totalorder %s1888_s27, 2  ;;  %p2042_p3 = por %p195_p2, %p39_p12 }
  0x3b   : > { %s2038_s17 = scalar_select %p30_p1, %s1884_s26, %s32_s15  }
  0x3c   : > { %p41_p0 = por %p40_p9, %p39_p12  ;;  %s269_s21 = sand.u32 1, %s1884_s26  }
  0x3d   : > { %s2300_s20 = scalar_select %p2042_p3, 1, 0 }
  0x3e   : > { %s1307_s22 = sshll.u32 %s1888_s27, 10  ;;  %s1258_s16 = sshll.u32 %s269_s21, 6 }
  0x3f   : > { %s2051_s10 = scalar_lea.hbm %s2280_s0, %s1307_s22  ;;  %s273_s11 = scalar_lea.vmem [#allocation2], %s1258_s16 }
  0x40   : > { %s280_s13 = sshll.u32 %s273_s11, 4  ;;  %p2053_p11 = pnand %p1506_p13, %p41_p0  ;;  %s2057_s13 = int_to_ptr.vmem [resolvable:$true] %s280_s13 }
  0x41   : > { %s2059_s15 = scalar_lea.sflag [#allocation3], %s269_s21  ;;  %s1788_s18 = scalar_lea.hbm %s2051_s10, 1024 }
  0x42   : > { %p1789_p2 = scmp.ne.s32.totalorder %s2051_s10, %s1788_s18  ;;  %p1790_p5 = pneg %p2053_p11 }
  0x43   : > { %s1793_s16 = scalar_lea.hbm %s2280_s0, 2048  ;;  %p1794_p1 = scmp.lt.s32.totalorder %s2051_s10, %s2280_s0 }
  0x44   : > { %p1791_p10 = pnand %p1790_p5, %p1789_p2  ;;  %p1795_p12 = scmp.lt.s32.totalorder %s1793_s16, %s1788_s18 }
  0x46   : > { %p1792_p7 = pneg %p1791_p10  ;;  %p1796_p9 = por %p1795_p12, %p1794_p1 }
  0x48   : > { %p1797_p13 = pnand %p1796_p9, %p1792_p7 }
  0x4a   : > { %1800 = shalt.err (!%p1797_p13)
}
  0x4b   : > { %s1801_s21 = scalar_lea.vmem %s2057_s13, 1024  ;;  %s1895_s19 = smov [#allocation2]  }
  0x4c   : > { %p1802_p0 = scmp.ne.s32.totalorder %s2057_s13, %s1801_s21  ;;  %s1806_s1 = sshll.u32 %s1895_s19, 4  ;;  %s1807_s1 = int_to_ptr.vmem [resolvable:$false] %s1806_s1 }
  0x4d   : > { %s1808_s22 = scalar_lea.vmem %s1807_s1, 2048  ;;  %p1809_p10 = scmp.lt.s32.totalorder %s2057_s13, %s1807_s1 }
  0x4e   : > { %p1804_p6 = pnand %p1802_p0, %p1790_p5  ;;  %p1810_p3 = scmp.lt.s32.totalorder %s1808_s22, %s1801_s21 }
  0x50   : > { %p1805_p2 = pneg %p1804_p6  ;;  %p1811_p4 = por %p1810_p3, %p1809_p10 }
  0x52   : > { %p1812_p8 = pnand %p1811_p4, %p1805_p2 }
  0x54   : > { %1815 = shalt.err (!%p1812_p8)
}
  0x55   : > { %s2302_s18 = smov 4   ;;  %s2303_s23 = smov 64  }
  0x56   : > { %1498 = dma.hbm_to_vmem [thread:$0]  (!%p2053_p11), %s2051_s10, 1024, %s2057_s13, %s2059_s15, %s2303_s23, %s2303_s23, %s2302_s18  }
  0x57   : > { %p2304_p6 = scmp.ne.s32.totalorder %s2297_s9, 0 }
  0x58   : > { %s2086_s19 = sand.u32 (!%p2304_p6), 1, %s1880_s25   ;;  %p2305_p4 = scmp.ne.s32.totalorder (!%p2304_p6), %s2295_s30, 0 }
  0x59   : > { %292 = sbr.rel (%p2304_p6) target bundleno = 1126 (0x466), region = 48  ;;  %s1262_s1 = sshll.u32 (!%p2304_p6), %s2086_s19, 6 }
  0x5a   : > { %s295_s16 = scalar_lea.sflag (!%p2304_p6), [#allocation3], %s2086_s19  ;;  %s2090_s29 = scalar_lea.vmem (!%p2304_p6), [#allocation2], %s1262_s1 }
  0x5e   : > { %1859 = dma.done.wait (%p2305_p4), %s295_s16, 1024  }
  0x5f   : > { %1861 = vsyncadd (%p2305_p4), %s295_s16, 4294966272  ;;  %p2306_p8 = scmp.eq.s32.totalorder %s1960_s28, 0 }
  0x61   : > { %1863 = dma.done.wait (%p2306_p8), [#allocation6], 2048   ;;  %p2307_p3 = pmov %p2306_p8 }
  0x63   : > { %1865 = vsyncadd (%p2307_p3), [#allocation6], 4294965248  ;;  %p2308_p11 = pmov %p2307_p3 }
  0x64   : > { %p2309_p5 = pmov %p2307_p3 }
  0x65   : > { %1867 = dma.done.wait (%p2308_p11), [#allocation9], 1024  }
  0x66   : > { %1869 = vsyncadd (%p2309_p5), [#allocation9], 4294966272  ;;  %v1550_v0 = vld [vmem:[#allocation5 + $0x38] sm:$0xff]   ;;  %v1551_v1 = vld [vmem:[#allocation5 + $0x30] sm:$0xff]   ;;  %s1266_s11 = sshll.u32 %s2086_s19, 7  ;;  %s1308_s22 = sshll.u32 %s1960_s28, 11 }
  0x67   : > { %1357 = vmatprep.subr.bf16.mxu0 %v1550_v0  ;;  %v1552_v2 = vld [vmem:[#allocation5 + $0x28] sm:$0xff]   ;;  %v1553_v3 = vld [vmem:[#allocation5 + $0x20] sm:$0xff]   ;;  %v1554_v5 = vld [vmem:[#allocation5 + $0x18] sm:$0xff]   ;;  %s2197_s21 = scalar_lea.vmem [#allocation10], %s1266_s11  ;;  %s2233_s16 = scalar_lea.hbm %s2287_s7, %s1308_s22 }
  0x68   : > { %1358 = vmatpush3.bf16.msra.mxu0 %v1550_v0  ;;  %v1558_v4 = vld [vmem:[%s2090_s29] sm:$0xff]   ;;  %v1555_v6 = vld [vmem:[#allocation5 + $0x10] sm:$0xff]   ;;  %v1566_v7 = vld [vmem:[#allocation7 + $0x38] sm:$0xff]   ;;  %s1150_s18 = sshll.u32 %s2197_s21, 4  ;;  %s1137_s28 = scalar_lea.sflag [#allocation4], %s2086_s19  ;;  %s2235_s18 = int_to_ptr.vmem [resolvable:$true] %s1150_s18 }
  0x69   : > { %1359 = vmatprep.subr.bf16.mxu0 %v1551_v1  ;;  %1373 = vmatprep.mubr.bf16.mxu0 %v1558_v4  ;;  %v1567_v8 = vld [vmem:[#allocation7 + $0x30] sm:$0xff]   ;;  %v1556_v9 = vld [vmem:[#allocation5 + $0x8] sm:$0xff]   ;;  %v1557_v10 = vld [vmem:[#allocation5] sm:$0xff]   ;;  %p2310_p1 = scmp.ne.s32.totalorder %s2300_s20, 0  ;;  %s1896_s30 = smov [#allocation10]  }
  0x6a   : > { %1389 = vmatprep.subr.bf16.mxu1 %v1566_v7  ;;  %v1559_v11 = vld [vmem:[%s2090_s29 + $0x8] sm:$0xff]   ;;  %v1560_v12 = vld [vmem:[%s2090_s29 + $0x10] sm:$0xff]   ;;  %v1561_v13 = vld [vmem:[%s2090_s29 + $0x18] sm:$0xff]   ;;  %s1820_s9 = sshll.u32 %s1896_s30, 4  ;;  %s1821_s9 = int_to_ptr.vmem [resolvable:$false] %s1820_s9 }
  0x6b   : > { %1390 = vmatpush3.bf16.msra.mxu1 %v1566_v7  ;;  %v1562_v14 = vld [vmem:[%s2090_s29 + $0x20] sm:$0xff]   ;;  %v1563_v15 = vld [vmem:[%s2090_s29 + $0x28] sm:$0xff]   ;;  %v1564_v16 = vld [vmem:[%s2090_s29 + $0x30] sm:$0xff]   ;;  %s1822_s10 = scalar_lea.vmem %s1821_s9, 4096  ;;  %p1823_p13 = scmp.lt.s32.totalorder %s2235_s18, %s1821_s9 }
  0x6c   : > { %1360 = vmatpush3.bf16.msra.mxu0 %v1551_v1  ;;  %1391 = vmatprep.subr.bf16.mxu1 %v1567_v8  ;;  %v1565_v17 = vld [vmem:[%s2090_s29 + $0x38] sm:$0xff]   ;;  %v1568_v18 = vld [vmem:[#allocation7 + $0x28] sm:$0xff]   ;;  %v1569_v19 = vld [vmem:[#allocation7 + $0x20] sm:$0xff]   ;;  %s1816_s29 = scalar_lea.vmem %s2235_s18, 2048 }
  0x6d   : > { %1361 = vmatprep.subr.bf16.mxu0 %v1552_v2  ;;  %v1570_v20 = vld [vmem:[#allocation7 + $0x18] sm:$0xff]   ;;  %v1571_v21 = vld [vmem:[#allocation7 + $0x10] sm:$0xff]   ;;  %v1572_v22 = vld [vmem:[#allocation7 + $0x8] sm:$0xff]   ;;  %p1817_p7 = scmp.ne.s32.totalorder %s2235_s18, %s1816_s29  ;;  %p1824_p0 = scmp.lt.s32.totalorder %s1822_s10, %s1816_s29 }
  0x6e   : > { %v1573_v23 = vld [vmem:[#allocation7] sm:$0xff]   ;;  %v1574_v24 = vld [vmem:[#allocation8 + $0x38] sm:$0xff]   ;;  %v2112_v25 = vld [vmem:[#allocation8 + $0x30] sm:$0xff]  }
  0x6f   : > { %1392 = vmatpush3.bf16.msra.mxu1 %v1567_v8  ;;  %v1267_v27 = vld [vmem:[%s2282_s2] ss:$0 sm:$0xff]  ;;  %p1818_p12 = pnand %p1817_p7, %p2310_p1  ;;  %p1825_p2 = por %p1824_p0, %p1823_p13 }
  0x70   : > { %1362 = vmatpush3.bf16.msra.mxu0 %v1552_v2  ;;  %1393 = vmatprep.subr.bf16.mxu1 %v1568_v18 }
  0x71   : > { %1363 = vmatprep.subr.bf16.mxu0 %v1553_v3  ;;  %p1819_p9 = pneg %p1818_p12 }
  0x73   : > { %1394 = vmatpush3.bf16.msra.mxu1 %v1568_v18  ;;  %p1826_p10 = pnand %p1825_p2, %p1819_p9 }
  0x74   : > { %1364 = vmatpush3.bf16.msra.mxu0 %v1553_v3  ;;  %1395 = vmatprep.subr.bf16.mxu1 %v1569_v19 }
  0x75   : > { %1365 = vmatprep.subr.bf16.mxu0 %v1554_v5 }
  0x77   : > { %1396 = vmatpush3.bf16.msra.mxu1 %v1569_v19  ;;  %v1576_v19 = vld [vmem:[#allocation8 + $0x28] sm:$0xff]  }
  0x78   : > { %1366 = vmatpush3.bf16.msra.mxu0 %v1554_v5  ;;  %1397 = vmatprep.subr.bf16.mxu1 %v1570_v20 }
  0x79   : > { %1367 = vmatprep.subr.bf16.mxu0 %v1555_v6 }
  0x7b   : > { %1398 = vmatpush3.bf16.msra.mxu1 %v1570_v20  ;;  %v1577_v20 = vld [vmem:[#allocation8 + $0x20] sm:$0xff]  }
  0x7c   : > { %1368 = vmatpush3.bf16.msra.mxu0 %v1555_v6  ;;  %1399 = vmatprep.subr.bf16.mxu1 %v1571_v21 }
  0x7d   : > { %1369 = vmatprep.subr.bf16.mxu0 %v1556_v9 }
  0x7f   : > { %1400 = vmatpush3.bf16.msra.mxu1 %v1571_v21  ;;  %v1578_v21 = vld [vmem:[#allocation8 + $0x18] sm:$0xff]  }
  0x80   : > { %1370 = vmatpush3.bf16.msra.mxu0 %v1556_v9  ;;  %1401 = vmatprep.subr.bf16.mxu1 %v1572_v22 }
  0x81   : > { %1371 = vmatprep.subr.bf16.mxu0 %v1557_v10 }
  0x83   : > { %1402 = vmatpush3.bf16.msra.mxu1 %v1572_v22  ;;  %v1579_v22 = vld [vmem:[#allocation8 + $0x10] sm:$0xff]  }
  0x84   : > { %1372 = vmatpush3.bf16.msra.mxu0 %v1557_v10  ;;  %1403 = vmatprep.subr.bf16.mxu1 %v1573_v23 }
  0x85   : > { %1421 = vmatprep.subr.bf16.mxu0 %v1574_v24 }
  0x87   : > { %1374 = vmatmul.mubr.bf16.vlgmr.msra.gmra.mxu0 %v1559_v11  ;;  %1404 = vmatpush3.bf16.msra.mxu1 %v1573_v23  ;;  %v1580_v23 = vld [vmem:[#allocation8 + $0x8] sm:$0xff]  }
  0x88   : > { %1377 = vmatprep.mubr.bf16.mxu0 %v1560_v12  ;;  %1453 = vmatprep.subr.bf16.mxu1 %v1574_v24 }
  0x89   : > { %1422 = vmatpush3.bf16.msra.mxu0 %v1574_v24 }
  0x8a   : > { %1423 = vmatprep.subr.bf16.mxu0 %v2112_v25 }
  0x8d   : > { %1424 = vmatpush3.bf16.msra.mxu0 %v2112_v25 }
  0x8e   : > { %1425 = vmatprep.subr.bf16.mxu0 %v1576_v19 }
  0x8f   : > { %1378 = vmatmul.mubr.bf16.gmra.mxu0 %v1561_v13 }
  0x90   : > { %1381 = vmatprep.mubr.bf16.mxu0 %v1562_v14 }
  0x91   : > { %1426 = vmatpush3.bf16.msra.mxu0 %v1576_v19 }
  0x92   : > { %1427 = vmatprep.subr.bf16.mxu0 %v1577_v20 }
  0x95   : > { %1428 = vmatpush3.bf16.msra.mxu0 %v1577_v20 }
  0x96   : > { %1429 = vmatprep.subr.bf16.mxu0 %v1578_v21 }
  0x97   : > { %1382 = vmatmul.mubr.bf16.gmra.mxu0 %v1563_v15 }
  0x98   : > { %1385 = vmatprep.mubr.bf16.mxu0 %v1564_v16 }
  0x99   : > { %1430 = vmatpush3.bf16.msra.mxu0 %v1578_v21 }
  0x9a   : > { %1431 = vmatprep.subr.bf16.mxu0 %v1579_v22 }
  0x9d   : > { %1432 = vmatpush3.bf16.msra.mxu0 %v1579_v22 }
  0x9e   : > { %1433 = vmatprep.subr.bf16.mxu0 %v1580_v23 }
  0x9f   : > { %1386 = vmatmul.mubr.bf16.gmra.mxu0 %v1565_v17 }
  0xa1   : > { %1434 = vmatpush3.bf16.msra.mxu0 %v1580_v23 }
 0x147   : > { %v1375_v26 = vpop.f32.mrf.mxu0 }
 0x148   : > { %v522_v32 = vadd.f32 %v1375_v26, %v1267_v27  ;;  %v1284_v26 = vld [vmem:[%s2284_s4] ss:$0 sm:$0xff] }
 0x149   : > { %v513_v28 = vpop.f32.mrf.mxu0 }
 0x14a   : > { %v514_v29 = vadd.f32 %v1267_v27, %v513_v28 }
 0x14b   : > { %v1376_v30 = vpop.f32.mrf.mxu0 }
 0x14c   : > { %v525_v31 = vadd.f32 %v1376_v30, %v1267_v27  ;;  %1582 = vtanh.f32 %v514_v29 }
 0x14d   : > { %v516_v33 = vpop.f32.mrf.mxu0 }
 0x14e   : > { %v517_v34 = vadd.f32 %v1267_v27, %v516_v33  ;;  %1584 = vtanh.f32 %v525_v31 }
 0x14f   : > { %v1379_v35 = vpop.f32.mrf.mxu0 }
 0x150   : > { %1586 = vtanh.f32 %v517_v34  ;;  %v538_v40 = vadd.f32 %v1379_v35, %v1267_v27 }
 0x151   : > { %1588 = vtanh.f32 %v522_v32  ;;  %v529_v36 = vpop.f32.mrf.mxu0 }
 0x152   : > { %v530_v37 = vadd.f32 %v1267_v27, %v529_v36 }
 0x153   : > { %v1380_v38 = vpop.f32.mrf.mxu0 }
 0x154   : > { %v541_v39 = vadd.f32 %v1380_v38, %v1267_v27  ;;  %1590 = vtanh.f32 %v530_v37 }
 0x155   : > { %v532_v41 = vpop.f32.mrf.mxu0 }
 0x156   : > { %v533_v42 = vadd.f32 %v1267_v27, %v532_v41  ;;  %1592 = vtanh.f32 %v541_v39 }
 0x157   : > { %v1383_v43 = vpop.f32.mrf.mxu0 }
 0x158   : > { %1594 = vtanh.f32 %v533_v42  ;;  %v554_v51 = vadd.f32 %v1383_v43, %v1267_v27 }
 0x159   : > { %1596 = vtanh.f32 %v538_v40  ;;  %v545_v44 = vpop.f32.mrf.mxu0  ;;  %v1583_v46 = vpop.eup %1582 }
 0x15a   : > { %v546_v45 = vadd.f32 %v1267_v27, %v545_v44 }
 0x15b   : > { %v1384_v47 = vpop.f32.mrf.mxu0  ;;  %v1585_v48 = vpop.eup %1584 }
 0x15c   : > { %v557_v49 = vadd.f32 %v1384_v47, %v1267_v27  ;;  %1598 = vtanh.f32 %v546_v45 }
 0x15d   : > { %v1587_v50 = vpop.eup %1586  ;;  %v548_v52 = vpop.f32.mrf.mxu0 }
 0x15e   : > { %v1589_v53 = vpop.eup %1588  ;;  %v549_v54 = vadd.f32 %v1267_v27, %v548_v52  ;;  %v592_v55 = vpack.c.bf16 %v1587_v50, %v1583_v46  ;;  %1600 = vtanh.f32 %v557_v49 }
 0x15f   : > { %v1387_v56 = vpop.f32.mrf.mxu0  ;;  %v593_v57 = vpack.c.bf16 %v1585_v48, %v1589_v53 }
 0x160   : > { %1602 = vtanh.f32 %v549_v54  ;;  %1405 = vmatprep.mubr.bf16.mxu1 %v592_v55  ;;  %v570_v1 = vadd.f32 %v1387_v56, %v1267_v27 }
 0x161   : > { %1604 = vtanh.f32 %v554_v51  ;;  %v561_v58 = vpop.f32.mrf.mxu0  ;;  %1406 = vmatmul.mubr.bf16.vlgmr.msra.gmra.mxu1 %v593_v57  ;;  %v1591_v60 = vpop.eup %1590 }
 0x162   : > { %v562_v59 = vadd.f32 %v1267_v27, %v561_v58  ;;  %1461 = vmatpush3.bf16.msra.mxu1 %v1574_v24  ;;  %v1581_v24 = vld [vmem:[#allocation8] sm:$0xff]  }
 0x163   : > { %v1388_v61 = vpop.f32.mrf.mxu0  ;;  %1454 = vmatprep.subr.bf16.mxu1 %v2112_v25  ;;  %v1593_v62 = vpop.eup %1592  ;;  %1435 = vmatprep.subr.bf16.mxu0 %v1581_v24 }
 0x164   : > { %v573_v63 = vadd.f32 %v1388_v61, %v1267_v27  ;;  %1606 = vtanh.f32 %v562_v59  ;;  %1436 = vmatpush3.bf16.msra.mxu0 %v1581_v24 }
 0x165   : > { %v1595_v0 = vpop.eup %1594  ;;  %v564_v2 = vpop.f32.mrf.mxu0 }
 0x166   : > { %v1597_v3 = vpop.eup %1596  ;;  %v565_v4 = vadd.f32 %v1267_v27, %v564_v2  ;;  %v594_v5 = vpack.c.bf16 %v1595_v0, %v1591_v60  ;;  %1462 = vmatpush3.bf16.msra.mxu1 %v2112_v25  ;;  %1608 = vtanh.f32 %v573_v63 }
 0x167   : > { %v595_v6 = vpack.c.bf16 %v1593_v62, %v1597_v3  ;;  %1455 = vmatprep.subr.bf16.mxu1 %v1576_v19 }
 0x168   : > { %1610 = vtanh.f32 %v565_v4  ;;  %1409 = vmatprep.mubr.bf16.mxu1 %v594_v5 }
 0x169   : > { %1612 = vtanh.f32 %v570_v1  ;;  %1410 = vmatmul.mubr.bf16.gmra.mxu1 %v595_v6  ;;  %v1599_v7 = vpop.eup %1598 }
 0x16a   : > { %1463 = vmatpush3.bf16.msra.mxu1 %v1576_v19 }
 0x16b   : > { %v1601_v8 = vpop.eup %1600  ;;  %1456 = vmatprep.subr.bf16.mxu1 %v1577_v20 }
 0x16d   : > { %v1603_v9 = vpop.eup %1602 }
 0x16e   : > { %v1605_v10 = vpop.eup %1604  ;;  %v596_v11 = vpack.c.bf16 %v1603_v9, %v1599_v7  ;;  %1464 = vmatpush3.bf16.msra.mxu1 %v1577_v20 }
 0x16f   : > { %v597_v12 = vpack.c.bf16 %v1601_v8, %v1605_v10  ;;  %1457 = vmatprep.subr.bf16.mxu1 %v1578_v21 }
 0x170   : > { %1413 = vmatprep.mubr.bf16.mxu1 %v596_v11 }
 0x171   : > { %1414 = vmatmul.mubr.bf16.gmra.mxu1 %v597_v12  ;;  %v1607_v13 = vpop.eup %1606 }
 0x172   : > { %1465 = vmatpush3.bf16.msra.mxu1 %v1578_v21 }
 0x173   : > { %v1609_v14 = vpop.eup %1608  ;;  %1458 = vmatprep.subr.bf16.mxu1 %v1579_v22 }
 0x175   : > { %v1611_v15 = vpop.eup %1610 }
 0x176   : > { %v1613_v16 = vpop.eup %1612  ;;  %v598_v17 = vpack.c.bf16 %v1611_v15, %v1607_v13  ;;  %1466 = vmatpush3.bf16.msra.mxu1 %v1579_v22 }
 0x177   : > { %v599_v18 = vpack.c.bf16 %v1609_v14, %v1613_v16  ;;  %1459 = vmatprep.subr.bf16.mxu1 %v1580_v23 }
 0x178   : > { %1417 = vmatprep.mubr.bf16.mxu1 %v598_v17 }
 0x179   : > { %1418 = vmatmul.mubr.bf16.gmra.mxu1 %v599_v18  ;;  %v1293_v18 = vld [vmem:[%s2286_s6] ss:$0 sm:$0xff] }
 0x17a   : > { %1467 = vmatpush3.bf16.msra.mxu1 %v1580_v23 }
 0x17b   : > { %1460 = vmatprep.subr.bf16.mxu1 %v1581_v24 }
 0x17e   : > { %1468 = vmatpush3.bf16.msra.mxu1 %v1581_v24 }
 0x221   : > { %v1407_v25 = vpop.f32.mrf.mxu1 }
 0x222   : > { %v714_v31 = vadd.f32 %v1407_v25, %v1284_v26 }
 0x223   : > { %v705_v27 = vpop.f32.mrf.mxu1 }
 0x224   : > { %v706_v28 = vadd.f32 %v1284_v26, %v705_v27 }
 0x225   : > { %v1408_v29 = vpop.f32.mrf.mxu1 }
 0x226   : > { %v717_v30 = vadd.f32 %v1408_v29, %v1284_v26  ;;  %1614 = vtanh.f32 %v706_v28 }
 0x227   : > { %v708_v32 = vpop.f32.mrf.mxu1 }
 0x228   : > { %v709_v33 = vadd.f32 %v1284_v26, %v708_v32  ;;  %1616 = vtanh.f32 %v717_v30 }
 0x229   : > { %v1411_v34 = vpop.f32.mrf.mxu1 }
 0x22a   : > { %1618 = vtanh.f32 %v709_v33  ;;  %v730_v39 = vadd.f32 %v1411_v34, %v1284_v26 }
 0x22b   : > { %1620 = vtanh.f32 %v714_v31  ;;  %v721_v35 = vpop.f32.mrf.mxu1 }
 0x22c   : > { %v722_v36 = vadd.f32 %v1284_v26, %v721_v35 }
 0x22d   : > { %v1412_v37 = vpop.f32.mrf.mxu1 }
 0x22e   : > { %v733_v38 = vadd.f32 %v1412_v37, %v1284_v26  ;;  %1622 = vtanh.f32 %v722_v36 }
 0x22f   : > { %v724_v40 = vpop.f32.mrf.mxu1 }
 0x230   : > { %v725_v41 = vadd.f32 %v1284_v26, %v724_v40  ;;  %1624 = vtanh.f32 %v733_v38 }
 0x231   : > { %v1415_v42 = vpop.f32.mrf.mxu1 }
 0x232   : > { %1626 = vtanh.f32 %v725_v41  ;;  %v746_v50 = vadd.f32 %v1415_v42, %v1284_v26 }
 0x233   : > { %1628 = vtanh.f32 %v730_v39  ;;  %v737_v43 = vpop.f32.mrf.mxu1  ;;  %v1615_v45 = vpop.eup %1614 }
 0x234   : > { %v738_v44 = vadd.f32 %v1284_v26, %v737_v43 }
 0x235   : > { %v1416_v46 = vpop.f32.mrf.mxu1  ;;  %v1617_v47 = vpop.eup %1616 }
 0x236   : > { %v749_v48 = vadd.f32 %v1416_v46, %v1284_v26  ;;  %1630 = vtanh.f32 %v738_v44 }
 0x237   : > { %v1619_v49 = vpop.eup %1618  ;;  %v740_v51 = vpop.f32.mrf.mxu1 }
 0x238   : > { %v1621_v52 = vpop.eup %1620  ;;  %v741_v53 = vadd.f32 %v1284_v26, %v740_v51  ;;  %v784_v54 = vpack.c.bf16 %v1619_v49, %v1615_v45  ;;  %1632 = vtanh.f32 %v749_v48 }
 0x239   : > { %v1419_v55 = vpop.f32.mrf.mxu1  ;;  %v785_v56 = vpack.c.bf16 %v1617_v47, %v1621_v52 }
 0x23a   : > { %1634 = vtanh.f32 %v741_v53  ;;  %1437 = vmatprep.mubr.bf16.mxu0 %v784_v54  ;;  %v762_v0 = vadd.f32 %v1419_v55, %v1284_v26 }
 0x23b   : > { %1636 = vtanh.f32 %v746_v50  ;;  %v753_v57 = vpop.f32.mrf.mxu1  ;;  %1438 = vmatmul.mubr.bf16.vlgmr.msra.gmra.mxu0 %v785_v56  ;;  %v1623_v59 = vpop.eup %1622 }
 0x23c   : > { %v754_v58 = vadd.f32 %v1284_v26, %v753_v57 }
 0x23d   : > { %v1420_v60 = vpop.f32.mrf.mxu1  ;;  %v1625_v61 = vpop.eup %1624 }
 0x23e   : > { %v765_v62 = vadd.f32 %v1420_v60, %v1284_v26  ;;  %1638 = vtanh.f32 %v754_v58 }
 0x23f   : > { %v1627_v63 = vpop.eup %1626  ;;  %v756_v1 = vpop.f32.mrf.mxu1 }
 0x240   : > { %v1629_v2 = vpop.eup %1628  ;;  %v757_v3 = vadd.f32 %v1284_v26, %v756_v1  ;;  %v786_v4 = vpack.c.bf16 %v1627_v63, %v1623_v59  ;;  %1640 = vtanh.f32 %v765_v62 }
 0x241   : > { %v787_v5 = vpack.c.bf16 %v1625_v61, %v1629_v2 }
 0x242   : > { %1642 = vtanh.f32 %v757_v3  ;;  %1441 = vmatprep.mubr.bf16.mxu0 %v786_v4 }
 0x243   : > { %1644 = vtanh.f32 %v762_v0  ;;  %1442 = vmatmul.mubr.bf16.gmra.mxu0 %v787_v5  ;;  %v1631_v6 = vpop.eup %1630 }
 0x245   : > { %v1633_v7 = vpop.eup %1632 }
 0x247   : > { %v1635_v8 = vpop.eup %1634 }
 0x248   : > { %v1637_v9 = vpop.eup %1636  ;;  %v788_v10 = vpack.c.bf16 %v1635_v8, %v1631_v6 }
 0x249   : > { %v789_v11 = vpack.c.bf16 %v1633_v7, %v1637_v9 }
 0x24a   : > { %1445 = vmatprep.mubr.bf16.mxu1 %v788_v10 }
 0x24b   : > { %1446 = vmatmul.mubr.bf16.vlgmr.msra.gmra.mxu1 %v789_v11  ;;  %v1639_v12 = vpop.eup %1638 }
 0x24d   : > { %v1641_v13 = vpop.eup %1640 }
 0x24f   : > { %v1643_v14 = vpop.eup %1642 }
 0x250   : > { %v1645_v15 = vpop.eup %1644  ;;  %v790_v16 = vpack.c.bf16 %v1643_v14, %v1639_v12 }
 0x251   : > { %v791_v17 = vpack.c.bf16 %v1641_v13, %v1645_v15 }
 0x252   : > { %1449 = vmatprep.mubr.bf16.mxu1 %v790_v16 }
 0x253   : > { %1450 = vmatmul.mubr.bf16.gmra.mxu1 %v791_v17 }
 0x2fb   : > { %v1439_v19 = vpop.f32.mrf.mxu0 }
 0x2fc   : > { %v906_v20 = vadd.f32 %v1439_v19, %v1293_v18 }
 0x2fd   : > { %v897_v21 = vpop.f32.mrf.mxu0 }
 0x2fe   : > { %v898_v22 = vadd.f32 %v1293_v18, %v897_v21  ;;  %964 = vmax.xlane.f32.xlu1 %v906_v20 }
 0x2ff   : > { %v1440_v23 = vpop.f32.mrf.mxu0 }
 0x300   : > { %v909_v24 = vadd.f32 %v1440_v23, %v1293_v18  ;;  %960 = vmax.xlane.f32.xlu0 %v898_v22 }
 0x301   : > { %v900_v25 = vpop.f32.mrf.mxu0 }
 0x302   : > { %v901_v26 = vadd.f32 %v1293_v18, %v900_v25  ;;  %966 = vmax.xlane.f32.xlu1 %v909_v24 }
 0x303   : > { %v1443_v27 = vpop.f32.mrf.mxu0 }
 0x304   : > { %962 = vmax.xlane.f32.xlu0 %v901_v26  ;;  %v922_v29 = vadd.f32 %v1443_v27, %v1293_v18 }
 0x305   : > { %v913_v28 = vpop.f32.mrf.mxu0 }
 0x306   : > { %v914_v33 = vadd.f32 %v1293_v18, %v913_v28 }
 0x307   : > { %v1444_v30 = vpop.f32.mrf.mxu0 }
 0x308   : > { %v925_v31 = vadd.f32 %v1444_v30, %v1293_v18  ;;  %972 = vmax.xlane.f32.xlu0 %v922_v29 }
 0x309   : > { %v916_v32 = vpop.f32.mrf.mxu0 }
 0x30a   : > { %974 = vmax.xlane.f32.xlu1 %v925_v31  ;;  %v917_v35 = vadd.f32 %v1293_v18, %v916_v32 }
 0x30b   : > { %v1447_v34 = vpop.f32.mrf.mxu1 }
 0x30c   : > { %968 = vmax.xlane.f32.xlu0 %v914_v33  ;;  %v938_v37 = vadd.f32 %v1447_v34, %v1293_v18 }
 0x30d   : > { %v929_v36 = vpop.f32.mrf.mxu1 }
 0x30e   : > { %970 = vmax.xlane.f32.xlu1 %v917_v35  ;;  %v930_v41 = vadd.f32 %v1293_v18, %v929_v36 }
 0x30f   : > { %v1448_v38 = vpop.f32.mrf.mxu1 }
 0x310   : > { %v941_v39 = vadd.f32 %v1448_v38, %v1293_v18  ;;  %980 = vmax.xlane.f32.xlu0 %v938_v37 }
 0x311   : > { %v932_v40 = vpop.f32.mrf.mxu1 }
 0x312   : > { %982 = vmax.xlane.f32.xlu1 %v941_v39  ;;  %v2127_v43 = vadd.f32 %v1293_v18, %v932_v40 }
 0x313   : > { %v1451_v42 = vpop.f32.mrf.mxu1 }
 0x314   : > { %976 = vmax.xlane.f32.xlu0 %v930_v41  ;;  %v2133_v48 = vadd.f32 %v1451_v42, %v1293_v18 }
 0x315   : > { %v945_v44 = vpop.f32.mrf.mxu1 }
 0x316   : > { %v2129_v45 = vadd.f32 %v1293_v18, %v945_v44  ;;  %978 = vmax.xlane.f32.xlu1 %v2127_v43 }
 0x317   : > { %v1452_v46 = vpop.f32.mrf.mxu1 }
 0x318   : > { %984 = vmax.xlane.f32.xlu0 %v2129_v45  ;;  %v2139_v50 = vadd.f32 %v1452_v46, %v1293_v18 }
 0x319   : > { %v948_v47 = vpop.f32.mrf.mxu1 }
 0x31a   : > { %v2135_v49 = vadd.f32 %v1293_v18, %v948_v47 }
 0x31c   : > { %986 = vmax.xlane.f32.xlu1 %v2135_v49  ;;  %988 = vmax.xlane.f32.xlu0 %v2133_v48 }
 0x320   : > { %990 = vmax.xlane.f32.xlu1 %v2139_v50 }
 0x387   : > { %v965_v51 = vpop.xlane.xlu1 %964 }
 0x388   : > { %v2142_v52 = vsub.f32 %v906_v20, %v965_v51 }
 0x389   : > { %v961_v53 = vpop.xlane.xlu0 %960 }
 0x38a   : > { %v1012_v54 = vmul.f32 1.442695, %v2142_v52  ;;  %v2145_v55 = vsub.f32 %v898_v22, %v961_v53 }
 0x38b   : > { %v967_v56 = vpop.xlane.xlu1 %966 }
 0x38c   : > { %1646 = vpow2.f32 %v1012_v54  ;;  %v1008_v57 = vmul.f32 1.442695, %v2145_v55  ;;  %v2148_v58 = vsub.f32 %v909_v24, %v967_v56 }
 0x38d   : > { %v963_v59 = vpop.xlane.xlu0 %962 }
 0x38e   : > { %v1014_v60 = vmul.f32 1.442695, %v2148_v58  ;;  %v2151_v61 = vsub.f32 %v901_v26, %v963_v59  ;;  %1648 = vpow2.f32 %v1008_v57 }
 0x390   : > { %1650 = vpow2.f32 %v1014_v60  ;;  %v1010_v62 = vmul.f32 1.442695, %v2151_v61 }
 0x391   : > { %v973_v63 = vpop.xlane.xlu0 %972 }
 0x392   : > { %v2154_v0 = vsub.f32 %v922_v29, %v973_v63  ;;  %1652 = vpow2.f32 %v1010_v62 }
 0x393   : > { %v975_v1 = vpop.xlane.xlu1 %974 }
 0x394   : > { %v1020_v2 = vmul.f32 1.442695, %v2154_v0  ;;  %v2157_v3 = vsub.f32 %v925_v31, %v975_v1 }
 0x395   : > { %v969_v4 = vpop.xlane.xlu0 %968 }
 0x396   : > { %1654 = vpow2.f32 %v1020_v2  ;;  %v1022_v5 = vmul.f32 1.442695, %v2157_v3  ;;  %v2160_v6 = vsub.f32 %v914_v33, %v969_v4 }
 0x397   : > { %v971_v7 = vpop.xlane.xlu1 %970 }
 0x398   : > { %1656 = vpow2.f32 %v1022_v5  ;;  %v1016_v8 = vmul.f32 1.442695, %v2160_v6  ;;  %v2163_v9 = vsub.f32 %v917_v35, %v971_v7 }
 0x399   : > { %v1647_v10 = vpop.eup %1646  ;;  %v981_v11 = vpop.xlane.xlu0 %980 }
 0x39a   : > { %1658 = vpow2.f32 %v1016_v8  ;;  %v1018_v12 = vmul.f32 1.442695, %v2163_v9  ;;  %v2166_v13 = vsub.f32 %v938_v37, %v981_v11  ;;  %1044 = vadd.xlane.f32.xlu0 %v1647_v10 }
 0x39b   : > { %v983_v14 = vpop.xlane.xlu1 %982  ;;  %v1649_v15 = vpop.eup %1648 }
 0x39c   : > { %1660 = vpow2.f32 %v1018_v12  ;;  %v1028_v16 = vmul.f32 1.442695, %v2166_v13  ;;  %v2169_v17 = vsub.f32 %v941_v39, %v983_v14 }
 0x39d   : > { %v1651_v18 = vpop.eup %1650  ;;  %v977_v19 = vpop.xlane.xlu0 %976 }
 0x39e   : > { %1662 = vpow2.f32 %v1028_v16  ;;  %v1030_v20 = vmul.f32 1.442695, %v2169_v17  ;;  %v2172_v21 = vsub.f32 %v930_v41, %v977_v19  ;;  %1046 = vadd.xlane.f32.xlu1 %v1651_v18  ;;  %1040 = vadd.xlane.f32.xlu0 %v1649_v15 }
 0x39f   : > { %v979_v22 = vpop.xlane.xlu1 %978  ;;  %v1653_v25 = vpop.eup %1652 }
 0x3a0   : > { %1664 = vpow2.f32 %v1030_v20  ;;  %v1024_v23 = vmul.f32 1.442695, %v2172_v21  ;;  %v2176_v24 = vsub.f32 %v2127_v43, %v979_v22 }
 0x3a1   : > { %v985_v26 = vpop.xlane.xlu0 %984 }
 0x3a2   : > { %1666 = vpow2.f32 %v1024_v23  ;;  %v1026_v27 = vmul.f32 1.442695, %v2176_v24  ;;  %v2180_v28 = vsub.f32 %v2129_v45, %v985_v26  ;;  %1042 = vadd.xlane.f32.xlu1 %v1653_v25 }
 0x3a3   : > { %v1655_v29 = vpop.eup %1654 }
 0x3a4   : > { %1668 = vpow2.f32 %v1026_v27  ;;  %v1032_v30 = vmul.f32 1.442695, %v2180_v28  ;;  %1052 = vadd.xlane.f32.xlu0 %v1655_v29 }
 0x3a5   : > { %v1657_v31 = vpop.eup %1656  ;;  %v987_v32 = vpop.xlane.xlu1 %986 }
 0x3a6   : > { %v989_v33 = vpop.xlane.xlu0 %988  ;;  %1670 = vpow2.f32 %v1032_v30  ;;  %v2184_v34 = vsub.f32 %v2135_v49, %v987_v32  ;;  %1054 = vadd.xlane.f32.xlu1 %v1657_v31 }
 0x3a7   : > { %v2187_v35 = vsub.f32 %v2133_v48, %v989_v33  ;;  %v1659_v36 = vpop.eup %1658 }
 0x3a8   : > { %v1034_v37 = vmul.f32 1.442695, %v2184_v34  ;;  %1048 = vadd.xlane.f32.xlu0 %v1659_v36 }
 0x3a9   : > { %v1036_v38 = vmul.f32 1.442695, %v2187_v35  ;;  %v1661_v39 = vpop.eup %1660  ;;  %v991_v40 = vpop.xlane.xlu1 %990 }
 0x3aa   : > { %1672 = vpow2.f32 %v1034_v37  ;;  %v2192_v41 = vsub.f32 %v2139_v50, %v991_v40  ;;  %1050 = vadd.xlane.f32.xlu1 %v1661_v39 }
 0x3ab   : > { %v1663_v42 = vpop.eup %1662  ;;  %1674 = vpow2.f32 %v1036_v38 }
 0x3ac   : > { %v1038_v43 = vmul.f32 1.442695, %v2192_v41  ;;  %1060 = vadd.xlane.f32.xlu0 %v1663_v42 }
 0x3ad   : > { %v1665_v44 = vpop.eup %1664 }
 0x3ae   : > { %1676 = vpow2.f32 %v1038_v43  ;;  %1062 = vadd.xlane.f32.xlu1 %v1665_v44 }
 0x3af   : > { %v1667_v45 = vpop.eup %1666 }
 0x3b0   : > { %1056 = vadd.xlane.f32.xlu0 %v1667_v45 }
 0x3b1   : > { %v1669_v46 = vpop.eup %1668 }
 0x3b2   : > { %1058 = vadd.xlane.f32.xlu1 %v1669_v46 }
 0x3b3   : > { %v1671_v47 = vpop.eup %1670 }
 0x3b4   : > { %1064 = vadd.xlane.f32.xlu0 %v1671_v47 }
 0x3b7   : > { %v1673_v48 = vpop.eup %1672 }
 0x3b8   : > { %v1675_v49 = vpop.eup %1674  ;;  %1066 = vadd.xlane.f32.xlu1 %v1673_v48 }
 0x3b9   : > { %1068 = vadd.xlane.f32.xlu0 %v1675_v49 }
 0x3bb   : > { %v1677_v50 = vpop.eup %1676 }
 0x3bc   : > { %1070 = vadd.xlane.f32.xlu1 %v1677_v50 }
 0x423   : > { %v1045_v51 = vpop.xlane.xlu0 %1044 }
 0x424   : > { %1678 = vlog2.f32 %v1045_v51 }
 0x427   : > { %v1047_v53 = vpop.xlane.xlu1 %1046  ;;  %v1041_v54 = vpop.xlane.xlu0 %1040 }
 0x428   : > { %1680 = vlog2.f32 %v1047_v53 }
 0x429   : > { %1682 = vlog2.f32 %v1041_v54 }
 0x42b   : > { %v1043_v56 = vpop.xlane.xlu1 %1042 }
 0x42c   : > { %1684 = vlog2.f32 %v1043_v56 }
 0x42d   : > { %v1053_v57 = vpop.xlane.xlu0 %1052 }
 0x42e   : > { %1686 = vlog2.f32 %v1053_v57 }
 0x42f   : > { %v1055_v59 = vpop.xlane.xlu1 %1054 }
 0x430   : > { %1688 = vlog2.f32 %v1055_v59 }
 0x431   : > { %v1679_v60 = vpop.eup %1678  ;;  %v1049_v62 = vpop.xlane.xlu0 %1048 }
 0x432   : > { %v1077_v63 = vmul.f32 0.6931472, %v1679_v60  ;;  %1690 = vlog2.f32 %v1049_v62 }
 0x433   : > { %v1051_v1 = vpop.xlane.xlu1 %1050 }
 0x434   : > { %v1106_v2 = vsub.f32 %v2142_v52, %v1077_v63  ;;  %1692 = vlog2.f32 %v1051_v1 }
 0x435   : > { %v1681_v4 = vpop.eup %1680  ;;  %v1061_v5 = vpop.xlane.xlu0 %1060 }
 0x436   : > { %v1683_v7 = vpop.eup %1682  ;;  %1122 = vst [vmem:[%s2197_s21 + $0x10] sm:$0xff] %v1106_v2  ;;  %v1079_v8 = vmul.f32 0.6931472, %v1681_v4  ;;  %1694 = vlog2.f32 %v1061_v5 }
 0x437   : > { %v1073_v10 = vmul.f32 0.6931472, %v1683_v7  ;;  %v1063_v11 = vpop.xlane.xlu1 %1062 }
 0x438   : > { %v1107_v12 = vsub.f32 %v2148_v58, %v1079_v8  ;;  %1696 = vlog2.f32 %v1063_v11 }
 0x439   : > { %v1685_v14 = vpop.eup %1684  ;;  %v1104_v52 = vsub.f32 %v2145_v55, %v1073_v10  ;;  %v1057_v15 = vpop.xlane.xlu0 %1056 }
 0x43a   : > { %1123 = vst [vmem:[%s2197_s21 + $0x18] sm:$0xff] %v1107_v12  ;;  %v1075_v16 = vmul.f32 0.6931472, %v1685_v14  ;;  %1698 = vlog2.f32 %v1057_v15 }
 0x43b   : > { %v1687_v18 = vpop.eup %1686  ;;  %1120 = vst [vmem:[%s2197_s21] sm:$0xff] %v1104_v52  ;;  %v1059_v19 = vpop.xlane.xlu1 %1058 }
 0x43c   : > { %v1105_v20 = vsub.f32 %v2151_v61, %v1075_v16  ;;  %v1085_v22 = vmul.f32 0.6931472, %v1687_v18  ;;  %1700 = vlog2.f32 %v1059_v19 }
 0x43d   : > { %v1689_v23 = vpop.eup %1688  ;;  %v1065_v58 = vpop.xlane.xlu0 %1064 }
 0x43e   : > { %1121 = vst [vmem:[%s2197_s21 + $0x8] sm:$0xff] %v1105_v20  ;;  %v1110_v25 = vsub.f32 %v2154_v0, %v1085_v22  ;;  %v1087_v55 = vmul.f32 0.6931472, %v1689_v23  ;;  %1702 = vlog2.f32 %v1065_v58 }
 0x43f   : > { %v1691_v26 = vpop.eup %1690 }
 0x440   : > { %1126 = vst [vmem:[%s2197_s21 + $0x30] sm:$0xff] %v1110_v25  ;;  %v1111_v27 = vsub.f32 %v2157_v3, %v1087_v55  ;;  %v1081_v29 = vmul.f32 0.6931472, %v1691_v26 }
 0x441   : > { %v1693_v30 = vpop.eup %1692  ;;  %v1067_v31 = vpop.xlane.xlu1 %1066 }
 0x442   : > { %1127 = vst [vmem:[%s2197_s21 + $0x38] sm:$0xff] %v1111_v27  ;;  %v1108_v61 = vsub.f32 %v2160_v6, %v1081_v29  ;;  %v1083_v32 = vmul.f32 0.6931472, %v1693_v30  ;;  %1704 = vlog2.f32 %v1067_v31  ;;  %v1069_v33 = vpop.xlane.xlu0 %1068 }
 0x443   : > { %v1695_v36 = vpop.eup %1694  ;;  %1706 = vlog2.f32 %v1069_v33 }
 0x444   : > { %1124 = vst [vmem:[%s2197_s21 + $0x20] sm:$0xff] %v1108_v61  ;;  %v1109_v0 = vsub.f32 %v2163_v9, %v1083_v32  ;;  %v1093_v37 = vmul.f32 0.6931472, %v1695_v36 }
 0x445   : > { %v1697_v3 = vpop.eup %1696  ;;  %v1071_v38 = vpop.xlane.xlu1 %1070 }
 0x446   : > { %1125 = vst [vmem:[%s2197_s21 + $0x28] sm:$0xff] %v1109_v0  ;;  %v1114_v39 = vsub.f32 %v2166_v13, %v1093_v37  ;;  %v1095_v40 = vmul.f32 0.6931472, %v1697_v3  ;;  %1708 = vlog2.f32 %v1071_v38 }
 0x447   : > { %v1699_v6 = vpop.eup %1698 }
 0x448   : > { %1130 = vst [vmem:[%s2197_s21 + $0x50] sm:$0xff] %v1114_v39  ;;  %v1115_v42 = vsub.f32 %v2169_v17, %v1095_v40  ;;  %v1089_v43 = vmul.f32 0.6931472, %v1699_v6 }
 0x449   : > { %v1701_v44 = vpop.eup %1700 }
 0x44a   : > { %1131 = vst [vmem:[%s2197_s21 + $0x58] sm:$0xff] %v1115_v42  ;;  %v1112_v9 = vsub.f32 %v2172_v21, %v1089_v43  ;;  %v1091_v45 = vmul.f32 0.6931472, %v1701_v44 }
 0x44b   : > { %v1703_v46 = vpop.eup %1702 }
 0x44c   : > { %1128 = vst [vmem:[%s2197_s21 + $0x40] sm:$0xff] %v1112_v9  ;;  %v1113_v13 = vsub.f32 %v2176_v24, %v1091_v45  ;;  %v1097_v47 = vmul.f32 0.6931472, %v1703_v46 }
 0x44e   : > { %1129 = vst [vmem:[%s2197_s21 + $0x48] sm:$0xff] %v1113_v13  ;;  %v1116_v48 = vsub.f32 %v2180_v28, %v1097_v47 }
 0x44f   : > { %v1705_v49 = vpop.eup %1704 }
 0x450   : > { %v1707_v17 = vpop.eup %1706  ;;  %1132 = vst [vmem:[%s2197_s21 + $0x60] sm:$0xff] %v1116_v48  ;;  %v1099_v50 = vmul.f32 0.6931472, %v1705_v49 }
 0x451   : > { %v1101_v51 = vmul.f32 0.6931472, %v1707_v17 }
 0x452   : > { %v1117_v21 = vsub.f32 %v2184_v34, %v1099_v50 }
 0x453   : > { %v1709_v53 = vpop.eup %1708  ;;  %v1118_v24 = vsub.f32 %v2187_v35, %v1101_v51 }
 0x454   : > { %1133 = vst [vmem:[%s2197_s21 + $0x68] sm:$0xff] %v1117_v21  ;;  %v1103_v54 = vmul.f32 0.6931472, %v1709_v53 }
 0x455   : > { %1134 = vst [vmem:[%s2197_s21 + $0x70] sm:$0xff] %v1118_v24 }
 0x456   : > { %v1119_v28 = vsub.f32 %v2192_v41, %v1103_v54 }
 0x458   : > { %1135 = vst [vmem:[%s2197_s21 + $0x78] sm:$0xff] %v1119_v28 }
 0x459   : > { %1829 = shalt.err (!%p1826_p10)
}
 0x45a   : > { %s1830_s13 = scalar_lea.hbm %s2233_s16, 2048  ;;  %s1834_s11 = scalar_lea.hbm %s2287_s7, 4096 }
 0x45b   : > { %p1831_p6 = scmp.ne.s32.totalorder %s2233_s16, %s1830_s13  ;;  %p1835_p3 = scmp.lt.s32.totalorder %s2233_s16, %s2287_s7 }
 0x45c   : > { %p1836_p11 = scmp.lt.s32.totalorder %s1834_s11, %s1830_s13 }
 0x45d   : > { %p1832_p4 = pnand %p1831_p6, %p2310_p1 }
 0x45e   : > { %p1837_p5 = por %p1836_p11, %p1835_p3 }
 0x45f   : > { %p1833_p8 = pneg %p1832_p4 }
 0x461   : > { %p1838_p7 = pnand %p1837_p5, %p1833_p8 }
 0x463   : > { %1841 = shalt.err (!%p1838_p7)
}
 0x464   : > { %s1897_s23 = smov 128   ;;  %s1898_s1 = smov 8  }
 0x465   : > { %1483 = dma.vmem_to_hbm [thread:$0]  (%p2310_p1), %s2235_s18, 2048, %s2233_s16, %s1137_s28, %s1897_s23, %s1897_s23, %s1898_s1  }
 0x466 PF: > { %s1165_s29 = sand.u32 1, %s1876_s24   ;;  %p2311_p12 = scmp.ne.s32.totalorder %s2296_s8, 0 }
 0x467   : > { %p2312_p9 = scmp.ge.s32.totalorder %s1888_s27, 2  ;;  %s1166_s30 = scalar_lea.sflag [#allocation4], %s1165_s29 }
 0x469   : > { %p1500_p13 = pnand %p2312_p9, %p2311_p12 }
 0x46b   : > { %p1501_p0 = pneg %p1500_p13 }
 0x46d   : > { %1871 = dma.done.wait (%p1501_p0), %s1166_s30, 2048  }
 0x46e   : > { %1873 = vsyncadd (%p1501_p0), %s1166_s30, 4294965248  ;;  %p22_p2 = scmp.ge.s32.totalorder %s2028_s14, 4   ;;  %s2313_s24 = smov %s1880_s25 }
 0x46f   : > { %s2314_s25 = smov %s1884_s26  ;;  %s2315_s26 = smov %s2038_s17 }
 0x470   : > { %s2316_s27 = smov %s2028_s14  ;;  %24 = sbr.rel (!%p22_p2) target bundleno = 9 (0x9), region = 105 }
 0x475   :  { %1171 = vsyncpa [#allocation3], 1 }
 0x476   :  { %1173 = vsyncpa [#allocation3 + $0x1], 1 }
 0x477   :  { %1174 = vsyncpa [#allocation6], 1 }
 0x478   :  { %1175 = vsyncpa [#allocation9], 1 }
 0x479   :  { %1176 = vsyncpa [#allocation4], 1 }
 0x47a   :  { %1178 = vsyncpa [#allocation4 + $0x1], 1 }

// kernel: tpu_custom_call.1
= control target key start
LH: loop header
LB: loop body
LE: loop exit
PB: predicated region body
PF: predicated region fallthrough
CT: control target
= control target key end

     0   :  { %s2280_s0 = inlined_call_operand.hbm [shape: bf16[256,128], index: 0, kind: input, shape index: {}]   ;;  %s2281_s1 = inlined_call_operand.hbm [shape: bf16[128,128], index: 1, kind: input, shape index: {}]   ;;  %s2282_s2 = inlined_call_operand.vmem [shape: f32[1,128], index: 2, kind: input, shape index: {}]   ;;  %s2283_s3 = inlined_call_operand.hbm [shape: bf16[128,128], index: 3, kind: input, shape index: {}]   ;;  %s2284_s4 = inlined_call_operand.vmem [shape: f32[1,128], index: 4, kind: input, shape index: {}]   ;;  %s2285_s5 = inlined_call_operand.hbm [shape: bf16[128,128], index: 5, kind: input, shape index: {}]   ;;  %s2286_s6 = inlined_call_operand.vmem [shape: f32[1,128], index: 6, kind: input, shape index: {}]   ;;  %s2287_s7 = inlined_call_operand.hbm [shape: f32[256,128], index: 7, kind: output, shape index: {}]  }
   0x1   :  { %2294 = sst [smem:[#allocation15_spill]] %s2281_s1 }
   0x2   :  { %12 = vsyncpa [#allocation3], 0 }
   0x3   :  { %14 = vsyncpa [#allocation3 + $0x1], 0 }
   0x4   :  { %15 = vsyncpa [#allocation6], 0 }
   0x5   :  { %16 = vsyncpa [#allocation9], 0 }
   0x6   :  { %17 = vsyncpa [#allocation4], 0 }
   0x7   :  { %19 = vsyncpa [#allocation4 + $0x1], 0  ;;  %s1939_s24 = smov 0   ;;  %s1941_s25 = smov 0  }
   0x8   :  { %s1943_s26 = smov 0   ;;  %s1945_s27 = smov 0  }
   0x9 LB: > { %s1960_s28 = sadd.s32 4294967295, %s1888_s27   ;;  %s1252_s29 = sadd.s32 4294967294, %s1888_s27   ;;  %s1888_s27 = sphi %s1945_s27, %s2316_s27   ;;  %s1884_s26 = sphi %s1943_s26, %s2315_s26   ;;  %s1880_s25 = sphi %s1941_s25, %s2314_s25   ;;  %s1876_s24 = sphi %s1939_s24, %s2313_s24  }
   0xa   : > { %p45_p0 = scmp.ne.s32.totalorder %s1880_s25, %s1876_s24  ;;  %p2288_p1 = scmp.eq.s32.totalorder %s1960_s28, 0 }
   0xb   : > { %p195_p2 = scmp.eq.s32.totalorder %s1960_s28, 1  ;;  %p201_p3 = scmp.eq.s32.totalorder %s1252_s29, 1 }
   0xc   : > { %p1969_p4 = por %p2288_p1, %p45_p0  ;;  %p1253_p5 = scmp.ge.s32.totalorder %s1888_s27, 1 }
   0xd   : > { %p1974_p6 = por %p201_p3, %p45_p0  ;;  %p208_p7 = scmp.lt.s32.totalorder %s1888_s27, 3 }
   0xe   : > { %s2295_s30 = scalar_select %p1969_p4, 1, 0 }
   0xf   : > { %s2296_s8 = scalar_select %p1974_p6, 1, 0 }
  0x10   : > { %p1979_p8 = pnand %p1253_p5, %p208_p7  ;;  %s1890_s10 = smov [#allocation5]  }
  0x11   : > { %s220_s11 = sshll.u32 %s1890_s10, 4  ;;  %s1891_s13 = smov [#allocation7]   ;;  %s221_s11 = int_to_ptr.vmem [resolvable:$true] %s220_s11 }
  0x12   : > { %s2297_s9 = scalar_select %p1979_p8, 1, 0 }
  0x13   : > { %p1485_p9 = pneg %p1979_p8  ;;  %s236_s14 = sshll.u32 %s1891_s13, 4  ;;  %s237_s14 = int_to_ptr.vmem [resolvable:$true] %s236_s14 }
  0x14   : > { %s1892_s15 = smov [#allocation8]   ;;  %s1721_s17 = scalar_lea.vmem %s221_s11, 1024 }
  0x15   : > { %p1988_p11 = pnand %p1485_p9, %p2288_p1  ;;  %s252_s16 = sshll.u32 %s1892_s15, 4  ;;  %s253_s16 = int_to_ptr.vmem [resolvable:$true] %s252_s16 }
  0x16   : > { %p1722_p13 = scmp.ne.s32.totalorder %s221_s11, %s1721_s17  ;;  %p1729_p5 = scmp.lt.s32.totalorder %s221_s11, %s221_s11 }
  0x17   : > { %p1712_p12 = pneg %p1988_p11  ;;  %p1730_p7 = scmp.lt.s32.totalorder %s1721_s17, %s1721_s17 }
  0x19   : > { %p1724_p0 = pnand %p1722_p13, %p1712_p12  ;;  %p1731_p9 = por %p1730_p7, %p1729_p5 }
  0x1b   : > { %p1725_p3 = pneg %p1724_p0 }
  0x1d   : > { %p1732_p10 = pnand %p1731_p9, %p1725_p3 }
  0x1f   : > { %1735 = shalt.err (!%p1732_p10)
}
  0x20   : > { %s2289_s18 = smov 64   ;;  %s2290_s19 = smov 4  }
  0x21   : > { %s2299_s1 = sld [smem:[#allocation15_spill]]  ;;  %s1747_s22 = scalar_lea.vmem %s237_s14, 1024 }
  0x22   : > { %p1748_p13 = scmp.ne.s32.totalorder %s237_s14, %s1747_s22  ;;  %p1755_p3 = scmp.lt.s32.totalorder %s237_s14, %s237_s14 }
  0x23   : > { %p1756_p10 = scmp.lt.s32.totalorder %s1747_s22, %s1747_s22 }
  0x24   : > { %p1750_p0 = pnand %p1748_p13, %p1712_p12 }
  0x25   : > { %p1757_p7 = por %p1756_p10, %p1755_p3 }
  0x26   : > { %p1751_p5 = pneg %p1750_p0 }
  0x27   : > { %1488 = dma.hbm_to_vmem [thread:$0]  (!%p1988_p11), %s2299_s1, 1024, %s221_s11, [#allocation6], %s2289_s18, %s2289_s18, %s2290_s19  }
  0x28   : > { %p1758_p9 = pnand %p1757_p7, %p1751_p5 }
  0x2a   : > { %1761 = shalt.err (!%p1758_p9)
}
  0x2b   : > { %1491 = dma.hbm_to_vmem [thread:$0]  (!%p1988_p11), %s2283_s3, 1024, %s237_s14, [#allocation6], %s2289_s18, %s2289_s18, %s2290_s19  }
  0x2c   : > { %s1773_s10 = scalar_lea.vmem %s253_s16, 1024  ;;  %p1781_p3 = scmp.lt.s32.totalorder %s253_s16, %s253_s16 }
  0x2d   : > { %p1774_p1 = scmp.ne.s32.totalorder %s253_s16, %s1773_s10  ;;  %p1782_p5 = scmp.lt.s32.totalorder %s1773_s10, %s1773_s10 }
  0x2f   : > { %p1776_p13 = pnand %p1774_p1, %p1712_p12  ;;  %p1783_p10 = por %p1782_p5, %p1781_p3 }
  0x31   : > { %p1777_p0 = pneg %p1776_p13 }
  0x33   : > { %p1784_p7 = pnand %p1783_p10, %p1777_p0 }
  0x35   : > { %1787 = shalt.err (!%p1784_p7)
}
  0x36   : > { %1494 = dma.hbm_to_vmem [thread:$0]  (!%p1988_p11), %s2285_s5, 1024, %s253_s16, [#allocation9], %s2289_s18, %s2289_s18, %s2290_s19  }
  0x37   : > { %s2028_s14 = sadd.s32 1, %s1888_s27   ;;  %s32_s15 = sadd.s32 1, %s1884_s26 }
  0x38   : > { %s29_s12 = ssub.s32 %s1888_s27, %s2028_s14  ;;  %p39_p12 = scmp.ne.s32.totalorder %s1884_s26, %s1880_s25 }
  0x39   : > { %p30_p1 = scmp.eq.s32.totalorder %s29_s12, 0  ;;  %p40_p9 = scmp.eq.s32.totalorder %s1888_s27, 0 }
  0x3a   : > { %p1506_p13 = scmp.lt.s32.totalorder %s1888_s27, 2  ;;  %p2042_p3 = por %p195_p2, %p39_p12 }
  0x3b   : > { %s2038_s17 = scalar_select %p30_p1, %s1884_s26, %s32_s15  }
  0x3c   : > { %p41_p0 = por %p40_p9, %p39_p12  ;;  %s269_s21 = sand.u32 1, %s1884_s26  }
  0x3d   : > { %s2300_s20 = scalar_select %p2042_p3, 1, 0 }
  0x3e   : > { %s1307_s22 = sshll.u32 %s1888_s27, 10  ;;  %s1258_s16 = sshll.u32 %s269_s21, 6 }
  0x3f   : > { %s2051_s10 = scalar_lea.hbm %s2280_s0, %s1307_s22  ;;  %s273_s11 = scalar_lea.vmem [#allocation2], %s1258_s16 }
  0x40   : > { %s280_s13 = sshll.u32 %s273_s11, 4  ;;  %p2053_p11 = pnand %p1506_p13, %p41_p0  ;;  %s2057_s13 = int_to_ptr.vmem [resolvable:$true] %s280_s13 }
  0x41   : > { %s2059_s15 = scalar_lea.sflag [#allocation3], %s269_s21  ;;  %s1788_s18 = scalar_lea.hbm %s2051_s10, 1024 }
  0x42   : > { %p1789_p2 = scmp.ne.s32.totalorder %s2051_s10, %s1788_s18  ;;  %p1790_p5 = pneg %p2053_p11 }
  0x43   : > { %s1793_s16 = scalar_lea.hbm %s2280_s0, 2048  ;;  %p1794_p1 = scmp.lt.s32.totalorder %s2051_s10, %s2280_s0 }
  0x44   : > { %p1791_p10 = pnand %p1790_p5, %p1789_p2  ;;  %p1795_p12 = scmp.lt.s32.totalorder %s1793_s16, %s1788_s18 }
  0x46   : > { %p1792_p7 = pneg %p1791_p10  ;;  %p1796_p9 = por %p1795_p12, %p1794_p1 }
  0x48   : > { %p1797_p13 = pnand %p1796_p9, %p1792_p7 }
  0x4a   : > { %1800 = shalt.err (!%p1797_p13)
}
  0x4b   : > { %s1801_s21 = scalar_lea.vmem %s2057_s13, 1024  ;;  %s1895_s19 = smov [#allocation2]  }
  0x4c   : > { %p1802_p0 = scmp.ne.s32.totalorder %s2057_s13, %s1801_s21  ;;  %s1806_s1 = sshll.u32 %s1895_s19, 4  ;;  %s1807_s1 = int_to_ptr.vmem [resolvable:$false] %s1806_s1 }
  0x4d   : > { %s1808_s22 = scalar_lea.vmem %s1807_s1, 2048  ;;  %p1809_p10 = scmp.lt.s32.totalorder %s2057_s13, %s1807_s1 }
  0x4e   : > { %p1804_p6 = pnand %p1802_p0, %p1790_p5  ;;  %p1810_p3 = scmp.lt.s32.totalorder %s1808_s22, %s1801_s21 }
  0x50   : > { %p1805_p2 = pneg %p1804_p6  ;;  %p1811_p4 = por %p1810_p3, %p1809_p10 }
  0x52   : > { %p1812_p8 = pnand %p1811_p4, %p1805_p2 }
  0x54   : > { %1815 = shalt.err (!%p1812_p8)
}
  0x55   : > { %s2302_s18 = smov 4   ;;  %s2303_s23 = smov 64  }
  0x56   : > { %1498 = dma.hbm_to_vmem [thread:$0]  (!%p2053_p11), %s2051_s10, 1024, %s2057_s13, %s2059_s15, %s2303_s23, %s2303_s23, %s2302_s18  }
  0x57   : > { %p2304_p6 = scmp.ne.s32.totalorder %s2297_s9, 0 }
  0x58   : > { %s2086_s19 = sand.u32 (!%p2304_p6), 1, %s1880_s25   ;;  %p2305_p4 = scmp.ne.s32.totalorder (!%p2304_p6), %s2295_s30, 0 }
  0x59   : > { %292 = sbr.rel (%p2304_p6) target bundleno = 1126 (0x466), region = 48  ;;  %s1262_s1 = sshll.u32 (!%p2304_p6), %s2086_s19, 6 }
  0x5a   : > { %s295_s16 = scalar_lea.sflag (!%p2304_p6), [#allocation3], %s2086_s19  ;;  %s2090_s29 = scalar_lea.vmem (!%p2304_p6), [#allocation2], %s1262_s1 }
  0x5e   : > { %1859 = dma.done.wait (%p2305_p4), %s295_s16, 1024  }
  0x5f   : > { %1861 = vsyncadd (%p2305_p4), %s295_s16, 4294966272  ;;  %p2306_p8 = scmp.eq.s32.totalorder %s1960_s28, 0 }
  0x61   : > { %1863 = dma.done.wait (%p2306_p8), [#allocation6], 2048   ;;  %p2307_p3 = pmov %p2306_p8 }
  0x63   : > { %1865 = vsyncadd (%p2307_p3), [#allocation6], 4294965248  ;;  %p2308_p11 = pmov %p2307_p3 }
  0x64   : > { %p2309_p5 = pmov %p2307_p3 }
  0x65   : > { %1867 = dma.done.wait (%p2308_p11), [#allocation9], 1024  }
  0x66   : > { %1869 = vsyncadd (%p2309_p5), [#allocation9], 4294966272  ;;  %v1550_v0 = vld [vmem:[#allocation5 + $0x38] sm:$0xff]   ;;  %v1551_v1 = vld [vmem:[#allocation5 + $0x30] sm:$0xff]   ;;  %s1266_s11 = sshll.u32 %s2086_s19, 7  ;;  %s1308_s22 = sshll.u32 %s1960_s28, 11 }
  0x67   : > { %1357 = vmatprep.subr.bf16.mxu0 %v1550_v0  ;;  %v1552_v2 = vld [vmem:[#allocation5 + $0x28] sm:$0xff]   ;;  %v1553_v3 = vld [vmem:[#allocation5 + $0x20] sm:$0xff]   ;;  %v1554_v5 = vld [vmem:[#allocation5 + $0x18] sm:$0xff]   ;;  %s2197_s21 = scalar_lea.vmem [#allocation10], %s1266_s11  ;;  %s2233_s16 = scalar_lea.hbm %s2287_s7, %s1308_s22 }
  0x68   : > { %1358 = vmatpush3.bf16.msra.mxu0 %v1550_v0  ;;  %v1558_v4 = vld [vmem:[%s2090_s29] sm:$0xff]   ;;  %v1555_v6 = vld [vmem:[#allocation5 + $0x10] sm:$0xff]   ;;  %v1566_v7 = vld [vmem:[#allocation7 + $0x38] sm:$0xff]   ;;  %s1150_s18 = sshll.u32 %s2197_s21, 4  ;;  %s1137_s28 = scalar_lea.sflag [#allocation4], %s2086_s19  ;;  %s2235_s18 = int_to_ptr.vmem [resolvable:$true] %s1150_s18 }
  0x69   : > { %1359 = vmatprep.subr.bf16.mxu0 %v1551_v1  ;;  %1373 = vmatprep.mubr.bf16.mxu0 %v1558_v4  ;;  %v1567_v8 = vld [vmem:[#allocation7 + $0x30] sm:$0xff]   ;;  %v1556_v9 = vld [vmem:[#allocation5 + $0x8] sm:$0xff]   ;;  %v1557_v10 = vld [vmem:[#allocation5] sm:$0xff]   ;;  %p2310_p1 = scmp.ne.s32.totalorder %s2300_s20, 0  ;;  %s1896_s30 = smov [#allocation10]  }
  0x6a   : > { %1389 = vmatprep.subr.bf16.mxu1 %v1566_v7  ;;  %v1559_v11 = vld [vmem:[%s2090_s29 + $0x8] sm:$0xff]   ;;  %v1560_v12 = vld [vmem:[%s2090_s29 + $0x10] sm:$0xff]   ;;  %v1561_v13 = vld [vmem:[%s2090_s29 + $0x18] sm:$0xff]   ;;  %s1820_s9 = sshll.u32 %s1896_s30, 4  ;;  %s1821_s9 = int_to_ptr.vmem [resolvable:$false] %s1820_s9 }
  0x6b   : > { %1390 = vmatpush3.bf16.msra.mxu1 %v1566_v7  ;;  %v1562_v14 = vld [vmem:[%s2090_s29 + $0x20] sm:$0xff]   ;;  %v1563_v15 = vld [vmem:[%s2090_s29 + $0x28] sm:$0xff]   ;;  %v1564_v16 = vld [vmem:[%s2090_s29 + $0x30] sm:$0xff]   ;;  %s1822_s10 = scalar_lea.vmem %s1821_s9, 4096  ;;  %p1823_p13 = scmp.lt.s32.totalorder %s2235_s18, %s1821_s9 }
  0x6c   : > { %1360 = vmatpush3.bf16.msra.mxu0 %v1551_v1  ;;  %1391 = vmatprep.subr.bf16.mxu1 %v1567_v8  ;;  %v1565_v17 = vld [vmem:[%s2090_s29 + $0x38] sm:$0xff]   ;;  %v1568_v18 = vld [vmem:[#allocation7 + $0x28] sm:$0xff]   ;;  %v1569_v19 = vld [vmem:[#allocation7 + $0x20] sm:$0xff]   ;;  %s1816_s29 = scalar_lea.vmem %s2235_s18, 2048 }
  0x6d   : > { %1361 = vmatprep.subr.bf16.mxu0 %v1552_v2  ;;  %v1570_v20 = vld [vmem:[#allocation7 + $0x18] sm:$0xff]   ;;  %v1571_v21 = vld [vmem:[#allocation7 + $0x10] sm:$0xff]   ;;  %v1572_v22 = vld [vmem:[#allocation7 + $0x8] sm:$0xff]   ;;  %p1817_p7 = scmp.ne.s32.totalorder %s2235_s18, %s1816_s29  ;;  %p1824_p0 = scmp.lt.s32.totalorder %s1822_s10, %s1816_s29 }
  0x6e   : > { %v1573_v23 = vld [vmem:[#allocation7] sm:$0xff]   ;;  %v1574_v24 = vld [vmem:[#allocation8 + $0x38] sm:$0xff]   ;;  %v2112_v25 = vld [vmem:[#allocation8 + $0x30] sm:$0xff]  }
  0x6f   : > { %1392 = vmatpush3.bf16.msra.mxu1 %v1567_v8  ;;  %v1267_v27 = vld [vmem:[%s2282_s2] ss:$0 sm:$0xff]  ;;  %p1818_p12 = pnand %p1817_p7, %p2310_p1  ;;  %p1825_p2 = por %p1824_p0, %p1823_p13 }
  0x70   : > { %1362 = vmatpush3.bf16.msra.mxu0 %v1552_v2  ;;  %1393 = vmatprep.subr.bf16.mxu1 %v1568_v18 }
  0x71   : > { %1363 = vmatprep.subr.bf16.mxu0 %v1553_v3  ;;  %p1819_p9 = pneg %p1818_p12 }
  0x73   : > { %1394 = vmatpush3.bf16.msra.mxu1 %v1568_v18  ;;  %p1826_p10 = pnand %p1825_p2, %p1819_p9 }
  0x74   : > { %1364 = vmatpush3.bf16.msra.mxu0 %v1553_v3  ;;  %1395 = vmatprep.subr.bf16.mxu1 %v1569_v19 }
  0x75   : > { %1365 = vmatprep.subr.bf16.mxu0 %v1554_v5 }
  0x77   : > { %1396 = vmatpush3.bf16.msra.mxu1 %v1569_v19  ;;  %v1576_v19 = vld [vmem:[#allocation8 + $0x28] sm:$0xff]  }
  0x78   : > { %1366 = vmatpush3.bf16.msra.mxu0 %v1554_v5  ;;  %1397 = vmatprep.subr.bf16.mxu1 %v1570_v20 }
  0x79   : > { %1367 = vmatprep.subr.bf16.mxu0 %v1555_v6 }
  0x7b   : > { %1398 = vmatpush3.bf16.msra.mxu1 %v1570_v20  ;;  %v1577_v20 = vld [vmem:[#allocation8 + $0x20] sm:$0xff]  }
  0x7c   : > { %1368 = vmatpush3.bf16.msra.mxu0 %v1555_v6  ;;  %1399 = vmatprep.subr.bf16.mxu1 %v1571_v21 }
  0x7d   : > { %1369 = vmatprep.subr.bf16.mxu0 %v1556_v9 }
  0x7f   : > { %1400 = vmatpush3.bf16.msra.mxu1 %v1571_v21  ;;  %v1578_v21 = vld [vmem:[#allocation8 + $0x18] sm:$0xff]  }
  0x80   : > { %1370 = vmatpush3.bf16.msra.mxu0 %v1556_v9  ;;  %1401 = vmatprep.subr.bf16.mxu1 %v1572_v22 }
  0x81   : > { %1371 = vmatprep.subr.bf16.mxu0 %v1557_v10 }
  0x83   : > { %1402 = vmatpush3.bf16.msra.mxu1 %v1572_v22  ;;  %v1579_v22 = vld [vmem:[#allocation8 + $0x10] sm:$0xff]  }
  0x84   : > { %1372 = vmatpush3.bf16.msra.mxu0 %v1557_v10  ;;  %1403 = vmatprep.subr.bf16.mxu1 %v1573_v23 }
  0x85   : > { %1421 = vmatprep.subr.bf16.mxu0 %v1574_v24 }
  0x87   : > { %1374 = vmatmul.mubr.bf16.vlgmr.msra.gmra.mxu0 %v1559_v11  ;;  %1404 = vmatpush3.bf16.msra.mxu1 %v1573_v23  ;;  %v1580_v23 = vld [vmem:[#allocation8 + $0x8] sm:$0xff]  }
  0x88   : > { %1377 = vmatprep.mubr.bf16.mxu0 %v1560_v12  ;;  %1453 = vmatprep.subr.bf16.mxu1 %v1574_v24 }
  0x89   : > { %1422 = vmatpush3.bf16.msra.mxu0 %v1574_v24 }
  0x8a   : > { %1423 = vmatprep.subr.bf16.mxu0 %v2112_v25 }
  0x8d   : > { %1424 = vmatpush3.bf16.msra.mxu0 %v2112_v25 }
  0x8e   : > { %1425 = vmatprep.subr.bf16.mxu0 %v1576_v19 }
  0x8f   : > { %1378 = vmatmul.mubr.bf16.gmra.mxu0 %v1561_v13 }
  0x90   : > { %1381 = vmatprep.mubr.bf16.mxu0 %v1562_v14 }
  0x91   : > { %1426 = vmatpush3.bf16.msra.mxu0 %v1576_v19 }
  0x92   : > { %1427 = vmatprep.subr.bf16.mxu0 %v1577_v20 }
  0x95   : > { %1428 = vmatpush3.bf16.msra.mxu0 %v1577_v20 }
  0x96   : > { %1429 = vmatprep.subr.bf16.mxu0 %v1578_v21 }
  0x97   : > { %1382 = vmatmul.mubr.bf16.gmra.mxu0 %v1563_v15 }
  0x98   : > { %1385 = vmatprep.mubr.bf16.mxu0 %v1564_v16 }
  0x99   : > { %1430 = vmatpush3.bf16.msra.mxu0 %v1578_v21 }
  0x9a   : > { %1431 = vmatprep.subr.bf16.mxu0 %v1579_v22 }
  0x9d   : > { %1432 = vmatpush3.bf16.msra.mxu0 %v1579_v22 }
  0x9e   : > { %1433 = vmatprep.subr.bf16.mxu0 %v1580_v23 }
  0x9f   : > { %1386 = vmatmul.mubr.bf16.gmra.mxu0 %v1565_v17 }
  0xa1   : > { %1434 = vmatpush3.bf16.msra.mxu0 %v1580_v23 }
 0x147   : > { %v1375_v26 = vpop.f32.mrf.mxu0 }
 0x148   : > { %v522_v32 = vadd.f32 %v1375_v26, %v1267_v27  ;;  %v1284_v26 = vld [vmem:[%s2284_s4] ss:$0 sm:$0xff] }
 0x149   : > { %v513_v28 = vpop.f32.mrf.mxu0 }
 0x14a   : > { %v514_v29 = vadd.f32 %v1267_v27, %v513_v28 }
 0x14b   : > { %v1376_v30 = vpop.f32.mrf.mxu0 }
 0x14c   : > { %v525_v31 = vadd.f32 %v1376_v30, %v1267_v27  ;;  %1582 = vtanh.f32 %v514_v29 }
 0x14d   : > { %v516_v33 = vpop.f32.mrf.mxu0 }
 0x14e   : > { %v517_v34 = vadd.f32 %v1267_v27, %v516_v33  ;;  %1584 = vtanh.f32 %v525_v31 }
 0x14f   : > { %v1379_v35 = vpop.f32.mrf.mxu0 }
 0x150   : > { %1586 = vtanh.f32 %v517_v34  ;;  %v538_v40 = vadd.f32 %v1379_v35, %v1267_v27 }
 0x151   : > { %1588 = vtanh.f32 %v522_v32  ;;  %v529_v36 = vpop.f32.mrf.mxu0 }
 0x152   : > { %v530_v37 = vadd.f32 %v1267_v27, %v529_v36 }
 0x153   : > { %v1380_v38 = vpop.f32.mrf.mxu0 }
 0x154   : > { %v541_v39 = vadd.f32 %v1380_v38, %v1267_v27  ;;  %1590 = vtanh.f32 %v530_v37 }
 0x155   : > { %v532_v41 = vpop.f32.mrf.mxu0 }
 0x156   : > { %v533_v42 = vadd.f32 %v1267_v27, %v532_v41  ;;  %1592 = vtanh.f32 %v541_v39 }
 0x157   : > { %v1383_v43 = vpop.f32.mrf.mxu0 }
 0x158   : > { %1594 = vtanh.f32 %v533_v42  ;;  %v554_v51 = vadd.f32 %v1383_v43, %v1267_v27 }
 0x159   : > { %1596 = vtanh.f32 %v538_v40  ;;  %v545_v44 = vpop.f32.mrf.mxu0  ;;  %v1583_v46 = vpop.eup %1582 }
 0x15a   : > { %v546_v45 = vadd.f32 %v1267_v27, %v545_v44 }
 0x15b   : > { %v1384_v47 = vpop.f32.mrf.mxu0  ;;  %v1585_v48 = vpop.eup %1584 }
 0x15c   : > { %v557_v49 = vadd.f32 %v1384_v47, %v1267_v27  ;;  %1598 = vtanh.f32 %v546_v45 }
 0x15d   : > { %v1587_v50 = vpop.eup %1586  ;;  %v548_v52 = vpop.f32.mrf.mxu0 }
 0x15e   : > { %v1589_v53 = vpop.eup %1588  ;;  %v549_v54 = vadd.f32 %v1267_v27, %v548_v52  ;;  %v592_v55 = vpack.c.bf16 %v1587_v50, %v1583_v46  ;;  %1600 = vtanh.f32 %v557_v49 }
 0x15f   : > { %v1387_v56 = vpop.f32.mrf.mxu0  ;;  %v593_v57 = vpack.c.bf16 %v1585_v48, %v1589_v53 }
 0x160   : > { %1602 = vtanh.f32 %v549_v54  ;;  %1405 = vmatprep.mubr.bf16.mxu1 %v592_v55  ;;  %v570_v1 = vadd.f32 %v1387_v56, %v1267_v27 }
 0x161   : > { %1604 = vtanh.f32 %v554_v51  ;;  %v561_v58 = vpop.f32.mrf.mxu0  ;;  %1406 = vmatmul.mubr.bf16.vlgmr.msra.gmra.mxu1 %v593_v57  ;;  %v1591_v60 = vpop.eup %1590 }
 0x162   : > { %v562_v59 = vadd.f32 %v1267_v27, %v561_v58  ;;  %1461 = vmatpush3.bf16.msra.mxu1 %v1574_v24  ;;  %v1581_v24 = vld [vmem:[#allocation8] sm:$0xff]  }
 0x163   : > { %v1388_v61 = vpop.f32.mrf.mxu0  ;;  %1454 = vmatprep.subr.bf16.mxu1 %v2112_v25  ;;  %v1593_v62 = vpop.eup %1592  ;;  %1435 = vmatprep.subr.bf16.mxu0 %v1581_v24 }
 0x164   : > { %v573_v63 = vadd.f32 %v1388_v61, %v1267_v27  ;;  %1606 = vtanh.f32 %v562_v59  ;;  %1436 = vmatpush3.bf16.msra.mxu0 %v1581_v24 }
 0x165   : > { %v1595_v0 = vpop.eup %1594  ;;  %v564_v2 = vpop.f32.mrf.mxu0 }
 0x166   : > { %v1597_v3 = vpop.eup %1596  ;;  %v565_v4 = vadd.f32 %v1267_v27, %v564_v2  ;;  %v594_v5 = vpack.c.bf16 %v1595_v0, %v1591_v60  ;;  %1462 = vmatpush3.bf16.msra.mxu1 %v2112_v25  ;;  %1608 = vtanh.f32 %v573_v63 }
 0x167   : > { %v595_v6 = vpack.c.bf16 %v1593_v62, %v1597_v3  ;;  %1455 = vmatprep.subr.bf16.mxu1 %v1576_v19 }
 0x168   : > { %1610 = vtanh.f32 %v565_v4  ;;  %1409 = vmatprep.mubr.bf16.mxu1 %v594_v5 }
 0x169   : > { %1612 = vtanh.f32 %v570_v1  ;;  %1410 = vmatmul.mubr.bf16.gmra.mxu1 %v595_v6  ;;  %v1599_v7 = vpop.eup %1598 }
 0x16a   : > { %1463 = vmatpush3.bf16.msra.mxu1 %v1576_v19 }
 0x16b   : > { %v1601_v8 = vpop.eup %1600  ;;  %1456 = vmatprep.subr.bf16.mxu1 %v1577_v20 }
 0x16d   : > { %v1603_v9 = vpop.eup %1602 }
 0x16e   : > { %v1605_v10 = vpop.eup %1604  ;;  %v596_v11 = vpack.c.bf16 %v1603_v9, %v1599_v7  ;;  %1464 = vmatpush3.bf16.msra.mxu1 %v1577_v20 }
 0x16f   : > { %v597_v12 = vpack.c.bf16 %v1601_v8, %v1605_v10  ;;  %1457 = vmatprep.subr.bf16.mxu1 %v1578_v21 }
 0x170   : > { %1413 = vmatprep.mubr.bf16.mxu1 %v596_v11 }
 0x171   : > { %1414 = vmatmul.mubr.bf16.gmra.mxu1 %v597_v12  ;;  %v1607_v13 = vpop.eup %1606 }
 0x172   : > { %1465 = vmatpush3.bf16.msra.mxu1 %v1578_v21 }
 0x173   : > { %v1609_v14 = vpop.eup %1608  ;;  %1458 = vmatprep.subr.bf16.mxu1 %v1579_v22 }
 0x175   : > { %v1611_v15 = vpop.eup %1610 }
 0x176   : > { %v1613_v16 = vpop.eup %1612  ;;  %v598_v17 = vpack.c.bf16 %v1611_v15, %v1607_v13  ;;  %1466 = vmatpush3.bf16.msra.mxu1 %v1579_v22 }
 0x177   : > { %v599_v18 = vpack.c.bf16 %v1609_v14, %v1613_v16  ;;  %1459 = vmatprep.subr.bf16.mxu1 %v1580_v23 }
 0x178   : > { %1417 = vmatprep.mubr.bf16.mxu1 %v598_v17 }
 0x179   : > { %1418 = vmatmul.mubr.bf16.gmra.mxu1 %v599_v18  ;;  %v1293_v18 = vld [vmem:[%s2286_s6] ss:$0 sm:$0xff] }
 0x17a   : > { %1467 = vmatpush3.bf16.msra.mxu1 %v1580_v23 }
 0x17b   : > { %1460 = vmatprep.subr.bf16.mxu1 %v1581_v24 }
 0x17e   : > { %1468 = vmatpush3.bf16.msra.mxu1 %v1581_v24 }
 0x221   : > { %v1407_v25 = vpop.f32.mrf.mxu1 }
 0x222   : > { %v714_v31 = vadd.f32 %v1407_v25, %v1284_v26 }
 0x223   : > { %v705_v27 = vpop.f32.mrf.mxu1 }
 0x224   : > { %v706_v28 = vadd.f32 %v1284_v26, %v705_v27 }
 0x225   : > { %v1408_v29 = vpop.f32.mrf.mxu1 }
 0x226   : > { %v717_v30 = vadd.f32 %v1408_v29, %v1284_v26  ;;  %1614 = vtanh.f32 %v706_v28 }
 0x227   : > { %v708_v32 = vpop.f32.mrf.mxu1 }
 0x228   : > { %v709_v33 = vadd.f32 %v1284_v26, %v708_v32  ;;  %1616 = vtanh.f32 %v717_v30 }
 0x229   : > { %v1411_v34 = vpop.f32.mrf.mxu1 }
 0x22a   : > { %1618 = vtanh.f32 %v709_v33  ;;  %v730_v39 = vadd.f32 %v1411_v34, %v1284_v26 }
 0x22b   : > { %1620 = vtanh.f32 %v714_v31  ;;  %v721_v35 = vpop.f32.mrf.mxu1 }
 0x22c   : > { %v722_v36 = vadd.f32 %v1284_v26, %v721_v35 }
 0x22d   : > { %v1412_v37 = vpop.f32.mrf.mxu1 }
 0x22e   : > { %v733_v38 = vadd.f32 %v1412_v37, %v1284_v26  ;;  %1622 = vtanh.f32 %v722_v36 }
 0x22f   : > { %v724_v40 = vpop.f32.mrf.mxu1 }
 0x230   : > { %v725_v41 = vadd.f32 %v1284_v26, %v724_v40  ;;  %1624 = vtanh.f32 %v733_v38 }
 0x231   : > { %v1415_v42 = vpop.f32.mrf.mxu1 }
 0x232   : > { %1626 = vtanh.f32 %v725_v41  ;;  %v746_v50 = vadd.f32 %v1415_v42, %v1284_v26 }
 0x233   : > { %1628 = vtanh.f32 %v730_v39  ;;  %v737_v43 = vpop.f32.mrf.mxu1  ;;  %v1615_v45 = vpop.eup %1614 }
 0x234   : > { %v738_v44 = vadd.f32 %v1284_v26, %v737_v43 }
 0x235   : > { %v1416_v46 = vpop.f32.mrf.mxu1  ;;  %v1617_v47 = vpop.eup %1616 }
 0x236   : > { %v749_v48 = vadd.f32 %v1416_v46, %v1284_v26  ;;  %1630 = vtanh.f32 %v738_v44 }
 0x237   : > { %v1619_v49 = vpop.eup %1618  ;;  %v740_v51 = vpop.f32.mrf.mxu1 }
 0x238   : > { %v1621_v52 = vpop.eup %1620  ;;  %v741_v53 = vadd.f32 %v1284_v26, %v740_v51  ;;  %v784_v54 = vpack.c.bf16 %v1619_v49, %v1615_v45  ;;  %1632 = vtanh.f32 %v749_v48 }
 0x239   : > { %v1419_v55 = vpop.f32.mrf.mxu1  ;;  %v785_v56 = vpack.c.bf16 %v1617_v47, %v1621_v52 }
 0x23a   : > { %1634 = vtanh.f32 %v741_v53  ;;  %1437 = vmatprep.mubr.bf16.mxu0 %v784_v54  ;;  %v762_v0 = vadd.f32 %v1419_v55, %v1284_v26 }
 0x23b   : > { %1636 = vtanh.f32 %v746_v50  ;;  %v753_v57 = vpop.f32.mrf.mxu1  ;;  %1438 = vmatmul.mubr.bf16.vlgmr.msra.gmra.mxu0 %v785_v56  ;;  %v1623_v59 = vpop.eup %1622 }
 0x23c   : > { %v754_v58 = vadd.f32 %v1284_v26, %v753_v57 }
 0x23d   : > { %v1420_v60 = vpop.f32.mrf.mxu1  ;;  %v1625_v61 = vpop.eup %1624 }
 0x23e   : > { %v765_v62 = vadd.f32 %v1420_v60, %v1284_v26  ;;  %1638 = vtanh.f32 %v754_v58 }
 0x23f   : > { %v1627_v63 = vpop.eup %1626  ;;  %v756_v1 = vpop.f32.mrf.mxu1 }
 0x240   : > { %v1629_v2 = vpop.eup %1628  ;;  %v757_v3 = vadd.f32 %v1284_v26, %v756_v1  ;;  %v786_v4 = vpack.c.bf16 %v1627_v63, %v1623_v59  ;;  %1640 = vtanh.f32 %v765_v62 }
 0x241   : > { %v787_v5 = vpack.c.bf16 %v1625_v61, %v1629_v2 }
 0x242   : > { %1642 = vtanh.f32 %v757_v3  ;;  %1441 = vmatprep.mubr.bf16.mxu0 %v786_v4 }
 0x243   : > { %1644 = vtanh.f32 %v762_v0  ;;  %1442 = vmatmul.mubr.bf16.gmra.mxu0 %v787_v5  ;;  %v1631_v6 = vpop.eup %1630 }
 0x245   : > { %v1633_v7 = vpop.eup %1632 }
 0x247   : > { %v1635_v8 = vpop.eup %1634 }
 0x248   : > { %v1637_v9 = vpop.eup %1636  ;;  %v788_v10 = vpack.c.bf16 %v1635_v8, %v1631_v6 }
 0x249   : > { %v789_v11 = vpack.c.bf16 %v1633_v7, %v1637_v9 }
 0x24a   : > { %1445 = vmatprep.mubr.bf16.mxu1 %v788_v10 }
 0x24b   : > { %1446 = vmatmul.mubr.bf16.vlgmr.msra.gmra.mxu1 %v789_v11  ;;  %v1639_v12 = vpop.eup %1638 }
 0x24d   : > { %v1641_v13 = vpop.eup %1640 }
 0x24f   : > { %v1643_v14 = vpop.eup %1642 }
 0x250   : > { %v1645_v15 = vpop.eup %1644  ;;  %v790_v16 = vpack.c.bf16 %v1643_v14, %v1639_v12 }
 0x251   : > { %v791_v17 = vpack.c.bf16 %v1641_v13, %v1645_v15 }
 0x252   : > { %1449 = vmatprep.mubr.bf16.mxu1 %v790_v16 }
 0x253   : > { %1450 = vmatmul.mubr.bf16.gmra.mxu1 %v791_v17 }
 0x2fb   : > { %v1439_v19 = vpop.f32.mrf.mxu0 }
 0x2fc   : > { %v906_v20 = vadd.f32 %v1439_v19, %v1293_v18 }
 0x2fd   : > { %v897_v21 = vpop.f32.mrf.mxu0 }
 0x2fe   : > { %v898_v22 = vadd.f32 %v1293_v18, %v897_v21  ;;  %964 = vmax.xlane.f32.xlu1 %v906_v20 }
 0x2ff   : > { %v1440_v23 = vpop.f32.mrf.mxu0 }
 0x300   : > { %v909_v24 = vadd.f32 %v1440_v23, %v1293_v18  ;;  %960 = vmax.xlane.f32.xlu0 %v898_v22 }
 0x301   : > { %v900_v25 = vpop.f32.mrf.mxu0 }
 0x302   : > { %v901_v26 = vadd.f32 %v1293_v18, %v900_v25  ;;  %966 = vmax.xlane.f32.xlu1 %v909_v24 }
 0x303   : > { %v1443_v27 = vpop.f32.mrf.mxu0 }
 0x304   : > { %962 = vmax.xlane.f32.xlu0 %v901_v26  ;;  %v922_v29 = vadd.f32 %v1443_v27, %v1293_v18 }
 0x305   : > { %v913_v28 = vpop.f32.mrf.mxu0 }
 0x306   : > { %v914_v33 = vadd.f32 %v1293_v18, %v913_v28 }
 0x307   : > { %v1444_v30 = vpop.f32.mrf.mxu0 }
 0x308   : > { %v925_v31 = vadd.f32 %v1444_v30, %v1293_v18  ;;  %972 = vmax.xlane.f32.xlu0 %v922_v29 }
 0x309   : > { %v916_v32 = vpop.f32.mrf.mxu0 }
 0x30a   : > { %974 = vmax.xlane.f32.xlu1 %v925_v31  ;;  %v917_v35 = vadd.f32 %v1293_v18, %v916_v32 }
 0x30b   : > { %v1447_v34 = vpop.f32.mrf.mxu1 }
 0x30c   : > { %968 = vmax.xlane.f32.xlu0 %v914_v33  ;;  %v938_v37 = vadd.f32 %v1447_v34, %v1293_v18 }
 0x30d   : > { %v929_v36 = vpop.f32.mrf.mxu1 }
 0x30e   : > { %970 = vmax.xlane.f32.xlu1 %v917_v35  ;;  %v930_v41 = vadd.f32 %v1293_v18, %v929_v36 }
 0x30f   : > { %v1448_v38 = vpop.f32.mrf.mxu1 }
 0x310   : > { %v941_v39 = vadd.f32 %v1448_v38, %v1293_v18  ;;  %980 = vmax.xlane.f32.xlu0 %v938_v37 }
 0x311   : > { %v932_v40 = vpop.f32.mrf.mxu1 }
 0x312   : > { %982 = vmax.xlane.f32.xlu1 %v941_v39  ;;  %v2127_v43 = vadd.f32 %v1293_v18, %v932_v40 }
 0x313   : > { %v1451_v42 = vpop.f32.mrf.mxu1 }
 0x314   : > { %976 = vmax.xlane.f32.xlu0 %v930_v41  ;;  %v2133_v48 = vadd.f32 %v1451_v42, %v1293_v18 }
 0x315   : > { %v945_v44 = vpop.f32.mrf.mxu1 }
 0x316   : > { %v2129_v45 = vadd.f32 %v1293_v18, %v945_v44  ;;  %978 = vmax.xlane.f32.xlu1 %v2127_v43 }
 0x317   : > { %v1452_v46 = vpop.f32.mrf.mxu1 }
 0x318   : > { %984 = vmax.xlane.f32.xlu0 %v2129_v45  ;;  %v2139_v50 = vadd.f32 %v1452_v46, %v1293_v18 }
 0x319   : > { %v948_v47 = vpop.f32.mrf.mxu1 }
 0x31a   : > { %v2135_v49 = vadd.f32 %v1293_v18, %v948_v47 }
 0x31c   : > { %986 = vmax.xlane.f32.xlu1 %v2135_v49  ;;  %988 = vmax.xlane.f32.xlu0 %v2133_v48 }
 0x320   : > { %990 = vmax.xlane.f32.xlu1 %v2139_v50 }
 0x387   : > { %v965_v51 = vpop.xlane.xlu1 %964 }
 0x388   : > { %v2142_v52 = vsub.f32 %v906_v20, %v965_v51 }
 0x389   : > { %v961_v53 = vpop.xlane.xlu0 %960 }
 0x38a   : > { %v1012_v54 = vmul.f32 1.442695, %v2142_v52  ;;  %v2145_v55 = vsub.f32 %v898_v22, %v961_v53 }
 0x38b   : > { %v967_v56 = vpop.xlane.xlu1 %966 }
 0x38c   : > { %1646 = vpow2.f32 %v1012_v54  ;;  %v1008_v57 = vmul.f32 1.442695, %v2145_v55  ;;  %v2148_v58 = vsub.f32 %v909_v24, %v967_v56 }
 0x38d   : > { %v963_v59 = vpop.xlane.xlu0 %962 }
 0x38e   : > { %v1014_v60 = vmul.f32 1.442695, %v2148_v58  ;;  %v2151_v61 = vsub.f32 %v901_v26, %v963_v59  ;;  %1648 = vpow2.f32 %v1008_v57 }
 0x390   : > { %1650 = vpow2.f32 %v1014_v60  ;;  %v1010_v62 = vmul.f32 1.442695, %v2151_v61 }
 0x391   : > { %v973_v63 = vpop.xlane.xlu0 %972 }
 0x392   : > { %v2154_v0 = vsub.f32 %v922_v29, %v973_v63  ;;  %1652 = vpow2.f32 %v1010_v62 }
 0x393   : > { %v975_v1 = vpop.xlane.xlu1 %974 }
 0x394   : > { %v1020_v2 = vmul.f32 1.442695, %v2154_v0  ;;  %v2157_v3 = vsub.f32 %v925_v31, %v975_v1 }
 0x395   : > { %v969_v4 = vpop.xlane.xlu0 %968 }
 0x396   : > { %1654 = vpow2.f32 %v1020_v2  ;;  %v1022_v5 = vmul.f32 1.442695, %v2157_v3  ;;  %v2160_v6 = vsub.f32 %v914_v33, %v969_v4 }
 0x397   : > { %v971_v7 = vpop.xlane.xlu1 %970 }
 0x398   : > { %1656 = vpow2.f32 %v1022_v5  ;;  %v1016_v8 = vmul.f32 1.442695, %v2160_v6  ;;  %v2163_v9 = vsub.f32 %v917_v35, %v971_v7 }
 0x399   : > { %v1647_v10 = vpop.eup %1646  ;;  %v981_v11 = vpop.xlane.xlu0 %980 }
 0x39a   : > { %1658 = vpow2.f32 %v1016_v8  ;;  %v1018_v12 = vmul.f32 1.442695, %v2163_v9  ;;  %v2166_v13 = vsub.f32 %v938_v37, %v981_v11  ;;  %1044 = vadd.xlane.f32.xlu0 %v1647_v10 }
 0x39b   : > { %v983_v14 = vpop.xlane.xlu1 %982  ;;  %v1649_v15 = vpop.eup %1648 }
 0x39c   : > { %1660 = vpow2.f32 %v1018_v12  ;;  %v1028_v16 = vmul.f32 1.442695, %v2166_v13  ;;  %v2169_v17 = vsub.f32 %v941_v39, %v983_v14 }
 0x39d   : > { %v1651_v18 = vpop.eup %1650  ;;  %v977_v19 = vpop.xlane.xlu0 %976 }
 0x39e   : > { %1662 = vpow2.f32 %v1028_v16  ;;  %v1030_v20 = vmul.f32 1.442695, %v2169_v17  ;;  %v2172_v21 = vsub.f32 %v930_v41, %v977_v19  ;;  %1046 = vadd.xlane.f32.xlu1 %v1651_v18  ;;  %1040 = vadd.xlane.f32.xlu0 %v1649_v15 }
 0x39f   : > { %v979_v22 = vpop.xlane.xlu1 %978  ;;  %v1653_v25 = vpop.eup %1652 }
 0x3a0   : > { %1664 = vpow2.f32 %v1030_v20  ;;  %v1024_v23 = vmul.f32 1.442695, %v2172_v21  ;;  %v2176_v24 = vsub.f32 %v2127_v43, %v979_v22 }
 0x3a1   : > { %v985_v26 = vpop.xlane.xlu0 %984 }
 0x3a2   : > { %1666 = vpow2.f32 %v1024_v23  ;;  %v1026_v27 = vmul.f32 1.442695, %v2176_v24  ;;  %v2180_v28 = vsub.f32 %v2129_v45, %v985_v26  ;;  %1042 = vadd.xlane.f32.xlu1 %v1653_v25 }
 0x3a3   : > { %v1655_v29 = vpop.eup %1654 }
 0x3a4   : > { %1668 = vpow2.f32 %v1026_v27  ;;  %v1032_v30 = vmul.f32 1.442695, %v2180_v28  ;;  %1052 = vadd.xlane.f32.xlu0 %v1655_v29 }
 0x3a5   : > { %v1657_v31 = vpop.eup %1656  ;;  %v987_v32 = vpop.xlane.xlu1 %986 }
 0x3a6   : > { %v989_v33 = vpop.xlane.xlu0 %988  ;;  %1670 = vpow2.f32 %v1032_v30  ;;  %v2184_v34 = vsub.f32 %v2135_v49, %v987_v32  ;;  %1054 = vadd.xlane.f32.xlu1 %v1657_v31 }
 0x3a7   : > { %v2187_v35 = vsub.f32 %v2133_v48, %v989_v33  ;;  %v1659_v36 = vpop.eup %1658 }
 0x3a8   : > { %v1034_v37 = vmul.f32 1.442695, %v2184_v34  ;;  %1048 = vadd.xlane.f32.xlu0 %v1659_v36 }
 0x3a9   : > { %v1036_v38 = vmul.f32 1.442695, %v2187_v35  ;;  %v1661_v39 = vpop.eup %1660  ;;  %v991_v40 = vpop.xlane.xlu1 %990 }
 0x3aa   : > { %1672 = vpow2.f32 %v1034_v37  ;;  %v2192_v41 = vsub.f32 %v2139_v50, %v991_v40  ;;  %1050 = vadd.xlane.f32.xlu1 %v1661_v39 }
 0x3ab   : > { %v1663_v42 = vpop.eup %1662  ;;  %1674 = vpow2.f32 %v1036_v38 }
 0x3ac   : > { %v1038_v43 = vmul.f32 1.442695, %v2192_v41  ;;  %1060 = vadd.xlane.f32.xlu0 %v1663_v42 }
 0x3ad   : > { %v1665_v44 = vpop.eup %1664 }
 0x3ae   : > { %1676 = vpow2.f32 %v1038_v43  ;;  %1062 = vadd.xlane.f32.xlu1 %v1665_v44 }
 0x3af   : > { %v1667_v45 = vpop.eup %1666 }
 0x3b0   : > { %1056 = vadd.xlane.f32.xlu0 %v1667_v45 }
 0x3b1   : > { %v1669_v46 = vpop.eup %1668 }
 0x3b2   : > { %1058 = vadd.xlane.f32.xlu1 %v1669_v46 }
 0x3b3   : > { %v1671_v47 = vpop.eup %1670 }
 0x3b4   : > { %1064 = vadd.xlane.f32.xlu0 %v1671_v47 }
 0x3b7   : > { %v1673_v48 = vpop.eup %1672 }
 0x3b8   : > { %v1675_v49 = vpop.eup %1674  ;;  %1066 = vadd.xlane.f32.xlu1 %v1673_v48 }
 0x3b9   : > { %1068 = vadd.xlane.f32.xlu0 %v1675_v49 }
 0x3bb   : > { %v1677_v50 = vpop.eup %1676 }
 0x3bc   : > { %1070 = vadd.xlane.f32.xlu1 %v1677_v50 }
 0x423   : > { %v1045_v51 = vpop.xlane.xlu0 %1044 }
 0x424   : > { %1678 = vlog2.f32 %v1045_v51 }
 0x427   : > { %v1047_v53 = vpop.xlane.xlu1 %1046  ;;  %v1041_v54 = vpop.xlane.xlu0 %1040 }
 0x428   : > { %1680 = vlog2.f32 %v1047_v53 }
 0x429   : > { %1682 = vlog2.f32 %v1041_v54 }
 0x42b   : > { %v1043_v56 = vpop.xlane.xlu1 %1042 }
 0x42c   : > { %1684 = vlog2.f32 %v1043_v56 }
 0x42d   : > { %v1053_v57 = vpop.xlane.xlu0 %1052 }
 0x42e   : > { %1686 = vlog2.f32 %v1053_v57 }
 0x42f   : > { %v1055_v59 = vpop.xlane.xlu1 %1054 }
 0x430   : > { %1688 = vlog2.f32 %v1055_v59 }
 0x431   : > { %v1679_v60 = vpop.eup %1678  ;;  %v1049_v62 = vpop.xlane.xlu0 %1048 }
 0x432   : > { %v1077_v63 = vmul.f32 0.6931472, %v1679_v60  ;;  %1690 = vlog2.f32 %v1049_v62 }
 0x433   : > { %v1051_v1 = vpop.xlane.xlu1 %1050 }
 0x434   : > { %v1106_v2 = vsub.f32 %v2142_v52, %v1077_v63  ;;  %1692 = vlog2.f32 %v1051_v1 }
 0x435   : > { %v1681_v4 = vpop.eup %1680  ;;  %v1061_v5 = vpop.xlane.xlu0 %1060 }
 0x436   : > { %v1683_v7 = vpop.eup %1682  ;;  %1122 = vst [vmem:[%s2197_s21 + $0x10] sm:$0xff] %v1106_v2  ;;  %v1079_v8 = vmul.f32 0.6931472, %v1681_v4  ;;  %1694 = vlog2.f32 %v1061_v5 }
 0x437   : > { %v1073_v10 = vmul.f32 0.6931472, %v1683_v7  ;;  %v1063_v11 = vpop.xlane.xlu1 %1062 }
 0x438   : > { %v1107_v12 = vsub.f32 %v2148_v58, %v1079_v8  ;;  %1696 = vlog2.f32 %v1063_v11 }
 0x439   : > { %v1685_v14 = vpop.eup %1684  ;;  %v1104_v52 = vsub.f32 %v2145_v55, %v1073_v10  ;;  %v1057_v15 = vpop.xlane.xlu0 %1056 }
 0x43a   : > { %1123 = vst [vmem:[%s2197_s21 + $0x18] sm:$0xff] %v1107_v12  ;;  %v1075_v16 = vmul.f32 0.6931472, %v1685_v14  ;;  %1698 = vlog2.f32 %v1057_v15 }
 0x43b   : > { %v1687_v18 = vpop.eup %1686  ;;  %1120 = vst [vmem:[%s2197_s21] sm:$0xff] %v1104_v52  ;;  %v1059_v19 = vpop.xlane.xlu1 %1058 }
 0x43c   : > { %v1105_v20 = vsub.f32 %v2151_v61, %v1075_v16  ;;  %v1085_v22 = vmul.f32 0.6931472, %v1687_v18  ;;  %1700 = vlog2.f32 %v1059_v19 }
 0x43d   : > { %v1689_v23 = vpop.eup %1688  ;;  %v1065_v58 = vpop.xlane.xlu0 %1064 }
 0x43e   : > { %1121 = vst [vmem:[%s2197_s21 + $0x8] sm:$0xff] %v1105_v20  ;;  %v1110_v25 = vsub.f32 %v2154_v0, %v1085_v22  ;;  %v1087_v55 = vmul.f32 0.6931472, %v1689_v23  ;;  %1702 = vlog2.f32 %v1065_v58 }
 0x43f   : > { %v1691_v26 = vpop.eup %1690 }
 0x440   : > { %1126 = vst [vmem:[%s2197_s21 + $0x30] sm:$0xff] %v1110_v25  ;;  %v1111_v27 = vsub.f32 %v2157_v3, %v1087_v55  ;;  %v1081_v29 = vmul.f32 0.6931472, %v1691_v26 }
 0x441   : > { %v1693_v30 = vpop.eup %1692  ;;  %v1067_v31 = vpop.xlane.xlu1 %1066 }
 0x442   : > { %1127 = vst [vmem:[%s2197_s21 + $0x38] sm:$0xff] %v1111_v27  ;;  %v1108_v61 = vsub.f32 %v2160_v6, %v1081_v29  ;;  %v1083_v32 = vmul.f32 0.6931472, %v1693_v30  ;;  %1704 = vlog2.f32 %v1067_v31  ;;  %v1069_v33 = vpop.xlane.xlu0 %1068 }
 0x443   : > { %v1695_v36 = vpop.eup %1694  ;;  %1706 = vlog2.f32 %v1069_v33 }
 0x444   : > { %1124 = vst [vmem:[%s2197_s21 + $0x20] sm:$0xff] %v1108_v61  ;;  %v1109_v0 = vsub.f32 %v2163_v9, %v1083_v32  ;;  %v1093_v37 = vmul.f32 0.6931472, %v1695_v36 }
 0x445   : > { %v1697_v3 = vpop.eup %1696  ;;  %v1071_v38 = vpop.xlane.xlu1 %1070 }
 0x446   : > { %1125 = vst [vmem:[%s2197_s21 + $0x28] sm:$0xff] %v1109_v0  ;;  %v1114_v39 = vsub.f32 %v2166_v13, %v1093_v37  ;;  %v1095_v40 = vmul.f32 0.6931472, %v1697_v3  ;;  %1708 = vlog2.f32 %v1071_v38 }
 0x447   : > { %v1699_v6 = vpop.eup %1698 }
 0x448   : > { %1130 = vst [vmem:[%s2197_s21 + $0x50] sm:$0xff] %v1114_v39  ;;  %v1115_v42 = vsub.f32 %v2169_v17, %v1095_v40  ;;  %v1089_v43 = vmul.f32 0.6931472, %v1699_v6 }
 0x449   : > { %v1701_v44 = vpop.eup %1700 }
 0x44a   : > { %1131 = vst [vmem:[%s2197_s21 + $0x58] sm:$0xff] %v1115_v42  ;;  %v1112_v9 = vsub.f32 %v2172_v21, %v1089_v43  ;;  %v1091_v45 = vmul.f32 0.6931472, %v1701_v44 }
 0x44b   : > { %v1703_v46 = vpop.eup %1702 }
 0x44c   : > { %1128 = vst [vmem:[%s2197_s21 + $0x40] sm:$0xff] %v1112_v9  ;;  %v1113_v13 = vsub.f32 %v2176_v24, %v1091_v45  ;;  %v1097_v47 = vmul.f32 0.6931472, %v1703_v46 }
 0x44e   : > { %1129 = vst [vmem:[%s2197_s21 + $0x48] sm:$0xff] %v1113_v13  ;;  %v1116_v48 = vsub.f32 %v2180_v28, %v1097_v47 }
 0x44f   : > { %v1705_v49 = vpop.eup %1704 }
 0x450   : > { %v1707_v17 = vpop.eup %1706  ;;  %1132 = vst [vmem:[%s2197_s21 + $0x60] sm:$0xff] %v1116_v48  ;;  %v1099_v50 = vmul.f32 0.6931472, %v1705_v49 }
 0x451   : > { %v1101_v51 = vmul.f32 0.6931472, %v1707_v17 }
 0x452   : > { %v1117_v21 = vsub.f32 %v2184_v34, %v1099_v50 }
 0x453   : > { %v1709_v53 = vpop.eup %1708  ;;  %v1118_v24 = vsub.f32 %v2187_v35, %v1101_v51 }
 0x454   : > { %1133 = vst [vmem:[%s2197_s21 + $0x68] sm:$0xff] %v1117_v21  ;;  %v1103_v54 = vmul.f32 0.6931472, %v1709_v53 }
 0x455   : > { %1134 = vst [vmem:[%s2197_s21 + $0x70] sm:$0xff] %v1118_v24 }
 0x456   : > { %v1119_v28 = vsub.f32 %v2192_v41, %v1103_v54 }
 0x458   : > { %1135 = vst [vmem:[%s2197_s21 + $0x78] sm:$0xff] %v1119_v28 }
 0x459   : > { %1829 = shalt.err (!%p1826_p10)
}
 0x45a   : > { %s1830_s13 = scalar_lea.hbm %s2233_s16, 2048  ;;  %s1834_s11 = scalar_lea.hbm %s2287_s7, 4096 }
 0x45b   : > { %p1831_p6 = scmp.ne.s32.totalorder %s2233_s16, %s1830_s13  ;;  %p1835_p3 = scmp.lt.s32.totalorder %s2233_s16, %s2287_s7 }
 0x45c   : > { %p1836_p11 = scmp.lt.s32.totalorder %s1834_s11, %s1830_s13 }
 0x45d   : > { %p1832_p4 = pnand %p1831_p6, %p2310_p1 }
 0x45e   : > { %p1837_p5 = por %p1836_p11, %p1835_p3 }
 0x45f   : > { %p1833_p8 = pneg %p1832_p4 }
 0x461   : > { %p1838_p7 = pnand %p1837_p5, %p1833_p8 }
 0x463   : > { %1841 = shalt.err (!%p1838_p7)
}
 0x464   : > { %s1897_s23 = smov 128   ;;  %s1898_s1 = smov 8  }
 0x465   : > { %1483 = dma.vmem_to_hbm [thread:$0]  (%p2310_p1), %s2235_s18, 2048, %s2233_s16, %s1137_s28, %s1897_s23, %s1897_s23, %s1898_s1  }
 0x466 PF: > { %s1165_s29 = sand.u32 1, %s1876_s24   ;;  %p2311_p12 = scmp.ne.s32.totalorder %s2296_s8, 0 }
 0x467   : > { %p2312_p9 = scmp.ge.s32.totalorder %s1888_s27, 2  ;;  %s1166_s30 = scalar_lea.sflag [#allocation4], %s1165_s29 }
 0x469   : > { %p1500_p13 = pnand %p2312_p9, %p2311_p12 }
 0x46b   : > { %p1501_p0 = pneg %p1500_p13 }
 0x46d   : > { %1871 = dma.done.wait (%p1501_p0), %s1166_s30, 2048  }
 0x46e   : > { %1873 = vsyncadd (%p1501_p0), %s1166_s30, 4294965248  ;;  %p22_p2 = scmp.ge.s32.totalorder %s2028_s14, 4   ;;  %s2313_s24 = smov %s1880_s25 }
 0x46f   : > { %s2314_s25 = smov %s1884_s26  ;;  %s2315_s26 = smov %s2038_s17 }
 0x470   : > { %s2316_s27 = smov %s2028_s14  ;;  %24 = sbr.rel (!%p22_p2) target bundleno = 9 (0x9), region = 105 }
 0x475   :  { %1171 = vsyncpa [#allocation3], 1 }
 0x476   :  { %1173 = vsyncpa [#allocation3 + $0x1], 1 }
 0x477   :  { %1174 = vsyncpa [#allocation6], 1 }
 0x478   :  { %1175 = vsyncpa [#allocation9], 1 }
 0x479   :  { %1176 = vsyncpa [#allocation4], 1 }
 0x47a   :  { %1178 = vsyncpa [#allocation4 + $0x1], 1 }

</bundles_post_ra>
